<compile_context>
chip_gen: v5e
topology: v5e:2x2
jax: 0.10.0
libtpu: 0.0.40
codegen_flags: <defaults>
</compile_context>

<pallas_src>
import jax
import jax.numpy as jnp
from jax import lax
from jax.experimental import pallas as pl
from jax.experimental.pallas import tpu as pltpu

EPS = 1e-5


def _round_up(x, m):
    return (x + m - 1) // m * m


def _fold_bn(gamma, beta, mean, var):
    scale = gamma * lax.rsqrt(var + EPS)
    return scale, beta - mean * scale


# ---------------------------------------------------------------------------
# Fused bottleneck kernel:
#   (1x1 conv + BN + ReLU) -> (3x3 stride-d conv + BN + ReLU) -> (1x1 conv + BN)
#   + (1x1 stride-d projection shortcut + BN), residual add.
# One grid step computes `tho` output rows (times Wq cols, incl. 1-2 discard
# columns) for one batch image.  All conv stages are MXU matmuls on bf16
# operands with f32 accumulation; intermediates never leave VMEM/vregs.
# ---------------------------------------------------------------------------
def _make_bottleneck_kernel(d, tho, Wq, Hq, L, num_row_tiles):
    taps = tuple((dy, dx) for dy in range(3) for dx in range(3))

    def kernel(xq_ref, w1_ref, w2_ref, b2_ref, w3_ref, wsc_ref, bout_ref, o_ref):
        # When there is a single row tile all slice starts are Python ints
        # (cheapest / most robust lowering).  With >1 tiles they become
        # dynamic pl.ds starts derived from program_id.
        if num_row_tiles == 1:
            ro0 = 0
        else:
            ro0 = pl.program_id(1) * tho
        f32 = jnp.float32
        bf16 = jnp.bfloat16

        h2 = None
        center = None
        # Statically unrolled 3x3 taps; each tap is a contiguous row slice of
        # the phase-deinterleaved, zero-padded input block.
        for t, (dy, dx) in enumerate(taps):
            py, oy = dy % d, dy // d
            px, ox = dx % d, dx // d
            start = (py * d + px) * (Hq * Wq) + (ro0 + oy) * Wq + ox
            xt = xq_ref[pl.ds(start, L), :]                   # (L, Cin+1) bf16
            if (dy, dx) == (1, 1):
                center = xt                                   # shortcut operand
            # Stage 1: 1x1 conv + folded BN + ReLU (bias carried by the
            # "valid" channel, so zero-padded taps stay exactly 0).
            y1 = jnp.maximum(
                jnp.dot(xt, w1_ref[...], preferred_element_type=f32), 0.0)
            # Stage 2 contribution of this tap.
            c = jnp.dot(y1.astype(bf16), w2_ref[t], preferred_element_type=f32)
            h2 = c if h2 is None else h2 + c

        h2 = jnp.maximum(h2 + b2_ref[...], 0.0).astype(bf16)
        # Stage 3 (1x1 conv + BN, no activation) + projection shortcut.
        out = jnp.dot(h2, w3_ref[...], preferred_element_type=f32)
        out = out + jnp.dot(center, wsc_ref[...], preferred_element_type=f32)
        # b3 + b_shortcut pre-summed into one bias.
        o_ref[...] = (out + bout_ref[...]).astype(o_ref.dtype)

    return kernel


def _pick_row_tile(Ho, Wq):
    """Output-row tile.  Caps the fused-GEMM tile (tho*Wq rows) so the per-step
    VMEM footprint stays modest on every generation (incl. v7x's 64 MiB),
    keeping tho*Wq a multiple of 8 sublanes unless the tile is the full extent."""
    cap_rows = 2048
    for tho in range(Ho, 0, -1):
        if Ho % tho:
            continue
        if tho * Wq > cap_rows and tho != 1:
            continue
        if tho != Ho and (tho * Wq) % 8:
            continue
        return tho
    return Ho


def _vmem_tile_bytes(shape, itemsize):
    s = list(shape)
    s[-1] = _round_up(s[-1], 128)
    if len(s) >= 2:
        s[-2] = _round_up(s[-2], 8)
    n = 1
    for v in s:
        n *= v
    return n * itemsize


# ---------------------------------------------------------------------------
# One-time weight preparation (outside the per-call jit path): BN folding,
# augmentation with the "valid" channel, bf16 casts, lane padding.
# ---------------------------------------------------------------------------
def prepare_layer(p, in_channels, out_channels, expansion=4):
    Cin, Cout = in_channels, out_channels
    Cexp = out_channels * expansion
    if Cin == Cexp:
        # TODO(synk): identity-shortcut path (in_channels == expanded_channels) is
        # shape-invalid under the module's downsampling rule and unused for n=1.
        raise NotImplementedError("identity-shortcut path not implemented")
    Cexp_p = _round_up(max(Cexp, 128), 128)   # lane-dense output stores

    s1, b1 = _fold_bn(p["g1"], p["b1"], p["m1"], p["v1"])
    s2, b2 = _fold_bn(p["g2"], p["b2"], p["m2"], p["v2"])
    s3, b3 = _fold_bn(p["g3"], p["b3"], p["m3"], p["v3"])
    ssc, bsc = _fold_bn(p["gsc"], p["bsc"], p["msc"], p["vsc"])

    # Stage 1: (Cin+1, Cout); last row is the folded bias (valid channel).
    w1 = p["w1"][:, :, 0, 0].T * s1[None, :]
    w1a = jnp.concatenate([w1, b1[None, :]], axis=0)
    # Stage 2: per-tap (9, Cout, Cout), tap order (dy, dx) row-major.
    w2 = jnp.transpose(p["w2"], (2, 3, 1, 0)).reshape(9, Cout, Cout) * s2[None, None, :]
    # Stage 3: (Cout, Cexp) and projection shortcut (Cin+1, Cexp) with a zero
    # row for the valid channel (so the centre tap can be reused unsliced).
    w3 = p["w3"][:, :, 0, 0].T * s3[None, :]
    wsc = p["wsc"][:, :, 0, 0].T * ssc[None, :]
    wsca = jnp.concatenate([wsc, jnp.zeros((1, Cexp), wsc.dtype)], axis=0)

    pad_c = Cexp_p - Cexp
    w3p = jnp.pad(w3, ((0, 0), (0, pad_c)))
    wscp = jnp.pad(wsca, ((0, 0), (0, pad_c)))
    bout = jnp.pad(b3 + bsc, ((0, pad_c),))[None, :]

    weights = (
        w1a.astype(jnp.bfloat16),
        w2.astype(jnp.bfloat16),
        b2[None, :].astype(jnp.float32),
        w3p.astype(jnp.bfloat16),
        wscp.astype(jnp.bfloat16),
        bout.astype(jnp.float32),
    )
    d = 2 if Cin != Cout else 1     # ResNetLayer downsampling rule
    meta = dict(d=d, Cin=Cin, Cout=Cout, Cexp=Cexp, Cexp_p=Cexp_p)
    return weights, meta


# ---------------------------------------------------------------------------
# Forward pass of ResNetLayer (n=1 bottleneck block, default module config).
# ---------------------------------------------------------------------------
def resnet_layer_apply(x_nchw, weights, meta):
    d, Cin, Cout = meta["d"], meta["Cin"], meta["Cout"]
    Cexp, Cexp_p = meta["Cexp"], meta["Cexp_p"]
    N, Cin_x, H, W = x_nchw.shape
    assert Cin_x == Cin
    if d == 2:
        assert H % 2 == 0 and W % 2 == 0, "even spatial dims required for stride 2"

    Ho = (H - 1) // d + 1
    Wo = (W - 1) // d + 1
    oy_max = 2 // d
    Hq = Ho + oy_max + 1            # per-phase padded height (incl. safety row)
    Hp = d * Hq                     # total padded height
    Wp = W + 2                      # total padded width
    Wq = Wp // d                    # per-phase width (incl. 1-2 discard cols)
    C1 = Cin + 1

    # NCHW -> NHWC, bf16, append "valid" channel, zero pad, de-interleave the
    # stride-d phases and flatten to one (rows, Cin+1) slab per image.  This is
    # a pure relayout (~1x input bytes), not an im2col blow-up.
    x = jnp.transpose(x_nchw, (0, 2, 3, 1)).astype(jnp.bfloat16)
    ones = jnp.ones((N, H, W, 1), jnp.bfloat16)
    xa = jnp.concatenate([x, ones], axis=-1)
    xp = jnp.pad(xa, ((0, 0), (1, Hp - H - 1), (1, 1), (0, 0)))
    xq = xp.reshape(N, Hq, d, Wq, d, C1).transpose(0, 2, 4, 1, 3, 5)
    xq = xq.reshape(N, d * d * Hq * Wq, C1)

    tho = _pick_row_tile(Ho, Wq)
    L = tho * Wq
    R = Ho // tho
    P = d * d * Hq * Wq

    w1a, w2t, b2, w3p, wscp, bout = weights
    kernel = _make_bottleneck_kernel(d, tho, Wq, Hq, L, R)

    # VMEM budget: double-buffered input/output blocks + weights + headroom
    # for live f32 intermediates.
    weight_bytes = (_vmem_tile_bytes((C1, Cout), 2)
                    + _vmem_tile_bytes((9, Cout, Cout), 2)
                    + _vmem_tile_bytes((1, Cout), 4)
                    + _vmem_tile_bytes((Cout, Cexp_p), 2)
                    + _vmem_tile_bytes((C1, Cexp_p), 2)
                    + _vmem_tile_bytes((1, Cexp_p), 4))
    io_bytes = _vmem_tile_bytes((P, C1), 2) + _vmem_tile_bytes((L, Cexp_p), 4)
    scratch_bytes = 6 * _vmem_tile_bytes((L, max(128, Cout, Cexp_p)), 4)
    vmem_limit = int(min(112 << 20,
                         max(32 << 20, 2 * (io_bytes + weight_bytes) + scratch_bytes)))

    def full2(shape):
        return pl.BlockSpec(shape, lambda n, r: (0,) * len(shape))

    out = pl.pallas_call(
        kernel,
        out_shape=jax.ShapeDtypeStruct((N, Ho * Wq, Cexp_p), jnp.float32),
        grid=(N, R),
        in_specs=[
            # whole de-interleaved image of batch n (invariant across r)
            pl.BlockSpec((None, P, C1), lambda n, r: (n, 0, 0)),
            full2((C1, Cout)),
            full2((9, Cout, Cout)),
            full2((1, Cout)),
            full2((Cout, Cexp_p)),
            full2((C1, Cexp_p)),
            full2((1, Cexp_p)),
        ],
        out_specs=pl.BlockSpec((None, L, Cexp_p), lambda n, r: (n, r, 0)),
        compiler_params=pltpu.CompilerParams(
            dimension_semantics=("parallel", "parallel"),
            vmem_limit_bytes=vmem_limit),
    )(xq, w1a, w2t, b2, w3p, wscp, bout)

    out = out.reshape(N, Ho, Wq, Cexp_p)[:, :, :Wo, :Cexp]
    return jnp.transpose(out, (0, 3, 1, 2))                     # back to NCHW


# ---------------------------------------------------------------------------
# Pure-JAX reference (for correctness check)
# ---------------------------------------------------------------------------
def resnet_layer_reference(x, p):
    def conv(x, w, stride, pad):
        return lax.conv_general_dilated(
            x, w, (stride, stride), ((pad, pad), (pad, pad)),
            dimension_numbers=("NCHW", "OIHW", "NCHW"))

    def bn(x, g, b, m, v):
        sc = (g * lax.rsqrt(v + EPS))[None, :, None, None]
        return sc * (x - m[None, :, None, None]) + b[None, :, None, None]

    Cin = x.shape[1]
    Cout = p["w1"].shape[0]
    d = 2 if Cin != Cout else 1
    y = jax.nn.relu(bn(conv(x, p["w1"], 1, 0), p["g1"], p["b1"], p["m1"], p["v1"]))
    y = jax.nn.relu(bn(conv(y, p["w2"], d, 1), p["g2"], p["b2"], p["m2"], p["v2"]))
    y = bn(conv(y, p["w3"], 1, 0), p["g3"], p["b3"], p["m3"], p["v3"])
    res = bn(conv(x, p["wsc"], d, 0), p["gsc"], p["bsc"], p["msc"], p["vsc"])
    return y + res


# ---------------------------------------------------------------------------
def make_params(key, in_channels, out_channels):
    expansion = 4
    cexp = out_channels * expansion
    ks = jax.random.split(key, 24)
    k = iter(ks)

    def w(shape):
        return 0.1 * jax.random.normal(next(k), shape, jnp.float32)

    def bn(c):
        return dict(
            g=1.0 + 0.1 * jax.random.normal(next(k), (c,), jnp.float32),
            b=0.1 * jax.random.normal(next(k), (c,), jnp.float32),
            m=0.1 * jax.random.normal(next(k), (c,), jnp.float32),
            v=jax.random.uniform(next(k), (c,), jnp.float32, 0.5, 1.5),
        )

    p = {}
    p["w1"] = w((out_channels, in_channels, 1, 1))
    p["w2"] = w((out_channels, out_channels, 3, 3))
    p["w3"] = w((cexp, out_channels, 1, 1))
    p["wsc"] = w((cexp, in_channels, 1, 1))
    for tag, c in (("1", out_channels), ("2", out_channels), ("3", cexp), ("sc", cexp)):
        d = bn(c)
        p["g" + tag], p["b" + tag], p["m" + tag], p["v" + tag] = d["g"], d["b"], d["m"], d["v"]
    return p


if __name__ == "__main__":
    root = jax.random.PRNGKey(0)

    # (N, Cin, H, W), bottleneck width out_channels (expanded = 4 * out_channels)
    configs = [
        ((2, 4, 16, 16), 8),   # Cin != Cout -> downsampling=2, projection shortcut
        ((2, 8, 8, 8), 8),     # Cin == Cout -> downsampling=1, projection shortcut
    ]
    for idx, (xshape, out_ch) in enumerate(configs):
        kx, kp = jax.random.split(jax.random.fold_in(root, idx))
        N, Cin, H, W = xshape
        x = jax.random.normal(kx, xshape, jnp.float32)
        params = make_params(kp, Cin, out_ch)

        weights, meta = prepare_layer(params, Cin, out_ch)
        fwd = jax.jit(lambda xx, ww: resnet_layer_apply(xx, ww, meta))
        out = jax.block_until_ready(fwd(x, weights))

        ref = jax.block_until_ready(jax.jit(resnet_layer_reference)(x, params))
        d = 2 if Cin != out_ch else 1
        expect = (N, out_ch * 4, H // d, W // d)
        assert out.shape == ref.shape == expect, (out.shape, ref.shape, expect)
        max_err = float(jnp.abs(out - ref).max())
        # bf16 matmul operands (f32 accumulation) -> loose-ish tolerance.
        assert jnp.allclose(out, ref, rtol=4e-2, atol=4e-2), max_err

    print("KERNEL_OK")
</pallas_src>

<mosaic_0001>
module attributes {stable_mosaic.version = 11 : i64} {
  func.func @kernel(%arg0: i32, %arg1: i32, %arg2: memref<1x360x5xbf16, #tpu.memory_space<vmem>>, %arg3: memref<5x8xbf16, #tpu.memory_space<vmem>>, %arg4: memref<9x8x8xbf16, #tpu.memory_space<vmem>>, %arg5: memref<1x8xf32, #tpu.memory_space<vmem>>, %arg6: memref<8x128xbf16, #tpu.memory_space<vmem>>, %arg7: memref<5x128xbf16, #tpu.memory_space<vmem>>, %arg8: memref<1x128xf32, #tpu.memory_space<vmem>>, %arg9: memref<1x72x128xf32, #tpu.memory_space<vmem>>) attributes {dimension_semantics = [#tpu.dimension_semantics<parallel>, #tpu.dimension_semantics<parallel>], iteration_bounds = array<i64: 2, 1>, scalar_prefetch = 0 : i64, scratch_operands = 0 : i64, tpu.core_type = #tpu.core_type<tc>, window_params = [{transform_indices = @transform_0, window_bounds = array<i64: 1, 360, 5>}, {pipeline_mode = #tpu.pipeline_mode<synchronous>, transform_indices = @transform_1, window_bounds = array<i64: 5, 8>}, {pipeline_mode = #tpu.pipeline_mode<synchronous>, transform_indices = @transform_2, window_bounds = array<i64: 9, 8, 8>}, {pipeline_mode = #tpu.pipeline_mode<synchronous>, transform_indices = @transform_3, window_bounds = array<i64: 1, 8>}, {pipeline_mode = #tpu.pipeline_mode<synchronous>, transform_indices = @transform_4, window_bounds = array<i64: 8, 128>}, {pipeline_mode = #tpu.pipeline_mode<synchronous>, transform_indices = @transform_5, window_bounds = array<i64: 5, 128>}, {pipeline_mode = #tpu.pipeline_mode<synchronous>, transform_indices = @transform_6, window_bounds = array<i64: 1, 128>}, {transform_indices = @transform_7, window_bounds = array<i64: 1, 72, 128>}]} {
    %c0 = arith.constant 0 : index
    %c0_0 = arith.constant 0 : index
    %c0_1 = arith.constant 0 : index
    %0 = vector.load %arg2[%c0, %c0_0, %c0_1] : memref<1x360x5xbf16, #tpu.memory_space<vmem>>, vector<1x72x5xbf16>
    %1 = vector.shape_cast %0 : vector<1x72x5xbf16> to vector<72x5xbf16>
    %c0_2 = arith.constant 0 : index
    %c0_3 = arith.constant 0 : index
    %2 = vector.load %arg3[%c0_2, %c0_3] : memref<5x8xbf16, #tpu.memory_space<vmem>>, vector<5x8xbf16>
    %cst = arith.constant dense<0.000000e+00> : vector<72x8xf32>
    %3 = tpu.matmul %1, %2, %cst {dimension_numbers = #tpu.dot_dimension_numbers<[1], [0], [0], [1], [0, 0, 1, 1], [], []>} : vector<72x5xbf16>, vector<5x8xbf16>, vector<72x8xf32> -> vector<72x8xf32>
    %cst_4 = arith.constant 0.000000e+00 : f32
    %4 = vector.broadcast %cst_4 : f32 to vector<72x8xf32>
    %5 = arith.maximumf %3, %4 : vector<72x8xf32>
    %6 = arith.truncf %5 : vector<72x8xf32> to vector<72x8xbf16>
    %c0_5 = arith.constant 0 : index
    %c0_6 = arith.constant 0 : index
    %c0_7 = arith.constant 0 : index
    %7 = vector.load %arg4[%c0_5, %c0_6, %c0_7] : memref<9x8x8xbf16, #tpu.memory_space<vmem>>, vector<1x8x8xbf16>
    %8 = vector.shape_cast %7 : vector<1x8x8xbf16> to vector<8x8xbf16>
    %cst_8 = arith.constant dense<0.000000e+00> : vector<72x8xf32>
    %9 = tpu.matmul %6, %8, %cst_8 {dimension_numbers = #tpu.dot_dimension_numbers<[1], [0], [0], [1], [0, 0, 1, 1], [], []>} : vector<72x8xbf16>, vector<8x8xbf16>, vector<72x8xf32> -> vector<72x8xf32>
    %c0_9 = arith.constant 0 : index
    %c90 = arith.constant 90 : index
    %c0_10 = arith.constant 0 : index
    %10 = vector.load %arg2[%c0_9, %c90, %c0_10] : memref<1x360x5xbf16, #tpu.memory_space<vmem>>, vector<1x72x5xbf16>
    %11 = vector.shape_cast %10 : vector<1x72x5xbf16> to vector<72x5xbf16>
    %c0_11 = arith.constant 0 : index
    %c0_12 = arith.constant 0 : index
    %12 = vector.load %arg3[%c0_11, %c0_12] : memref<5x8xbf16, #tpu.memory_space<vmem>>, vector<5x8xbf16>
    %cst_13 = arith.constant dense<0.000000e+00> : vector<72x8xf32>
    %13 = tpu.matmul %11, %12, %cst_13 {dimension_numbers = #tpu.dot_dimension_numbers<[1], [0], [0], [1], [0, 0, 1, 1], [], []>} : vector<72x5xbf16>, vector<5x8xbf16>, vector<72x8xf32> -> vector<72x8xf32>
    %cst_14 = arith.constant 0.000000e+00 : f32
    %14 = vector.broadcast %cst_14 : f32 to vector<72x8xf32>
    %15 = arith.maximumf %13, %14 : vector<72x8xf32>
    %16 = arith.truncf %15 : vector<72x8xf32> to vector<72x8xbf16>
    %c1 = arith.constant 1 : index
    %c0_15 = arith.constant 0 : index
    %c0_16 = arith.constant 0 : index
    %17 = vector.load %arg4[%c1, %c0_15, %c0_16] : memref<9x8x8xbf16, #tpu.memory_space<vmem>>, vector<1x8x8xbf16>
    %18 = vector.shape_cast %17 : vector<1x8x8xbf16> to vector<8x8xbf16>
    %cst_17 = arith.constant dense<0.000000e+00> : vector<72x8xf32>
    %19 = tpu.matmul %16, %18, %cst_17 {dimension_numbers = #tpu.dot_dimension_numbers<[1], [0], [0], [1], [0, 0, 1, 1], [], []>} : vector<72x8xbf16>, vector<8x8xbf16>, vector<72x8xf32> -> vector<72x8xf32>
    %20 = arith.addf %9, %19 : vector<72x8xf32>
    %c0_18 = arith.constant 0 : index
    %c1_19 = arith.constant 1 : index
    %c0_20 = arith.constant 0 : index
    %21 = vector.load %arg2[%c0_18, %c1_19, %c0_20] : memref<1x360x5xbf16, #tpu.memory_space<vmem>>, vector<1x72x5xbf16>
    %22 = vector.shape_cast %21 : vector<1x72x5xbf16> to vector<72x5xbf16>
    %c0_21 = arith.constant 0 : index
    %c0_22 = arith.constant 0 : index
    %23 = vector.load %arg3[%c0_21, %c0_22] : memref<5x8xbf16, #tpu.memory_space<vmem>>, vector<5x8xbf16>
    %cst_23 = arith.constant dense<0.000000e+00> : vector<72x8xf32>
    %24 = tpu.matmul %22, %23, %cst_23 {dimension_numbers = #tpu.dot_dimension_numbers<[1], [0], [0], [1], [0, 0, 1, 1], [], []>} : vector<72x5xbf16>, vector<5x8xbf16>, vector<72x8xf32> -> vector<72x8xf32>
    %cst_24 = arith.constant 0.000000e+00 : f32
    %25 = vector.broadcast %cst_24 : f32 to vector<72x8xf32>
    %26 = arith.maximumf %24, %25 : vector<72x8xf32>
    %27 = arith.truncf %26 : vector<72x8xf32> to vector<72x8xbf16>
    %c2 = arith.constant 2 : index
    %c0_25 = arith.constant 0 : index
    %c0_26 = arith.constant 0 : index
    %28 = vector.load %arg4[%c2, %c0_25, %c0_26] : memref<9x8x8xbf16, #tpu.memory_space<vmem>>, vector<1x8x8xbf16>
    %29 = vector.shape_cast %28 : vector<1x8x8xbf16> to vector<8x8xbf16>
    %cst_27 = arith.constant dense<0.000000e+00> : vector<72x8xf32>
    %30 = tpu.matmul %27, %29, %cst_27 {dimension_numbers = #tpu.dot_dimension_numbers<[1], [0], [0], [1], [0, 0, 1, 1], [], []>} : vector<72x8xbf16>, vector<8x8xbf16>, vector<72x8xf32> -> vector<72x8xf32>
    %31 = arith.addf %20, %30 : vector<72x8xf32>
    %c0_28 = arith.constant 0 : index
    %c180 = arith.constant 180 : index
    %c0_29 = arith.constant 0 : index
    %32 = vector.load %arg2[%c0_28, %c180, %c0_29] : memref<1x360x5xbf16, #tpu.memory_space<vmem>>, vector<1x72x5xbf16>
    %33 = vector.shape_cast %32 : vector<1x72x5xbf16> to vector<72x5xbf16>
    %c0_30 = arith.constant 0 : index
    %c0_31 = arith.constant 0 : index
    %34 = vector.load %arg3[%c0_30, %c0_31] : memref<5x8xbf16, #tpu.memory_space<vmem>>, vector<5x8xbf16>
    %cst_32 = arith.constant dense<0.000000e+00> : vector<72x8xf32>
    %35 = tpu.matmul %33, %34, %cst_32 {dimension_numbers = #tpu.dot_dimension_numbers<[1], [0], [0], [1], [0, 0, 1, 1], [], []>} : vector<72x5xbf16>, vector<5x8xbf16>, vector<72x8xf32> -> vector<72x8xf32>
    %cst_33 = arith.constant 0.000000e+00 : f32
    %36 = vector.broadcast %cst_33 : f32 to vector<72x8xf32>
    %37 = arith.maximumf %35, %36 : vector<72x8xf32>
    %38 = arith.truncf %37 : vector<72x8xf32> to vector<72x8xbf16>
    %c3 = arith.constant 3 : index
    %c0_34 = arith.constant 0 : index
    %c0_35 = arith.constant 0 : index
    %39 = vector.load %arg4[%c3, %c0_34, %c0_35] : memref<9x8x8xbf16, #tpu.memory_space<vmem>>, vector<1x8x8xbf16>
    %40 = vector.shape_cast %39 : vector<1x8x8xbf16> to vector<8x8xbf16>
    %cst_36 = arith.constant dense<0.000000e+00> : vector<72x8xf32>
    %41 = tpu.matmul %38, %40, %cst_36 {dimension_numbers = #tpu.dot_dimension_numbers<[1], [0], [0], [1], [0, 0, 1, 1], [], []>} : vector<72x8xbf16>, vector<8x8xbf16>, vector<72x8xf32> -> vector<72x8xf32>
    %42 = arith.addf %31, %41 : vector<72x8xf32>
    %c0_37 = arith.constant 0 : index
    %c270 = arith.constant 270 : index
    %c0_38 = arith.constant 0 : index
    %43 = vector.load %arg2[%c0_37, %c270, %c0_38] : memref<1x360x5xbf16, #tpu.memory_space<vmem>>, vector<1x72x5xbf16>
    %44 = vector.shape_cast %43 : vector<1x72x5xbf16> to vector<72x5xbf16>
    %c0_39 = arith.constant 0 : index
    %c0_40 = arith.constant 0 : index
    %45 = vector.load %arg3[%c0_39, %c0_40] : memref<5x8xbf16, #tpu.memory_space<vmem>>, vector<5x8xbf16>
    %cst_41 = arith.constant dense<0.000000e+00> : vector<72x8xf32>
    %46 = tpu.matmul %44, %45, %cst_41 {dimension_numbers = #tpu.dot_dimension_numbers<[1], [0], [0], [1], [0, 0, 1, 1], [], []>} : vector<72x5xbf16>, vector<5x8xbf16>, vector<72x8xf32> -> vector<72x8xf32>
    %cst_42 = arith.constant 0.000000e+00 : f32
    %47 = vector.broadcast %cst_42 : f32 to vector<72x8xf32>
    %48 = arith.maximumf %46, %47 : vector<72x8xf32>
    %49 = arith.truncf %48 : vector<72x8xf32> to vector<72x8xbf16>
    %c4 = arith.constant 4 : index
    %c0_43 = arith.constant 0 : index
    %c0_44 = arith.constant 0 : index
    %50 = vector.load %arg4[%c4, %c0_43, %c0_44] : memref<9x8x8xbf16, #tpu.memory_space<vmem>>, vector<1x8x8xbf16>
    %51 = vector.shape_cast %50 : vector<1x8x8xbf16> to vector<8x8xbf16>
    %cst_45 = arith.constant dense<0.000000e+00> : vector<72x8xf32>
    %52 = tpu.matmul %49, %51, %cst_45 {dimension_numbers = #tpu.dot_dimension_numbers<[1], [0], [0], [1], [0, 0, 1, 1], [], []>} : vector<72x8xbf16>, vector<8x8xbf16>, vector<72x8xf32> -> vector<72x8xf32>
    %53 = arith.addf %42, %52 : vector<72x8xf32>
    %c0_46 = arith.constant 0 : index
    %c181 = arith.constant 181 : index
    %c0_47 = arith.constant 0 : index
    %54 = vector.load %arg2[%c0_46, %c181, %c0_47] : memref<1x360x5xbf16, #tpu.memory_space<vmem>>, vector<1x72x5xbf16>
    %55 = vector.shape_cast %54 : vector<1x72x5xbf16> to vector<72x5xbf16>
    %c0_48 = arith.constant 0 : index
    %c0_49 = arith.constant 0 : index
    %56 = vector.load %arg3[%c0_48, %c0_49] : memref<5x8xbf16, #tpu.memory_space<vmem>>, vector<5x8xbf16>
    %cst_50 = arith.constant dense<0.000000e+00> : vector<72x8xf32>
    %57 = tpu.matmul %55, %56, %cst_50 {dimension_numbers = #tpu.dot_dimension_numbers<[1], [0], [0], [1], [0, 0, 1, 1], [], []>} : vector<72x5xbf16>, vector<5x8xbf16>, vector<72x8xf32> -> vector<72x8xf32>
    %cst_51 = arith.constant 0.000000e+00 : f32
    %58 = vector.broadcast %cst_51 : f32 to vector<72x8xf32>
    %59 = arith.maximumf %57, %58 : vector<72x8xf32>
    %60 = arith.truncf %59 : vector<72x8xf32> to vector<72x8xbf16>
    %c5 = arith.constant 5 : index
    %c0_52 = arith.constant 0 : index
    %c0_53 = arith.constant 0 : index
    %61 = vector.load %arg4[%c5, %c0_52, %c0_53] : memref<9x8x8xbf16, #tpu.memory_space<vmem>>, vector<1x8x8xbf16>
    %62 = vector.shape_cast %61 : vector<1x8x8xbf16> to vector<8x8xbf16>
    %cst_54 = arith.constant dense<0.000000e+00> : vector<72x8xf32>
    %63 = tpu.matmul %60, %62, %cst_54 {dimension_numbers = #tpu.dot_dimension_numbers<[1], [0], [0], [1], [0, 0, 1, 1], [], []>} : vector<72x8xbf16>, vector<8x8xbf16>, vector<72x8xf32> -> vector<72x8xf32>
    %64 = arith.addf %53, %63 : vector<72x8xf32>
    %c0_55 = arith.constant 0 : index
    %c9 = arith.constant 9 : index
    %c0_56 = arith.constant 0 : index
    %65 = vector.load %arg2[%c0_55, %c9, %c0_56] : memref<1x360x5xbf16, #tpu.memory_space<vmem>>, vector<1x72x5xbf16>
    %66 = vector.shape_cast %65 : vector<1x72x5xbf16> to vector<72x5xbf16>
    %c0_57 = arith.constant 0 : index
    %c0_58 = arith.constant 0 : index
    %67 = vector.load %arg3[%c0_57, %c0_58] : memref<5x8xbf16, #tpu.memory_space<vmem>>, vector<5x8xbf16>
    %cst_59 = arith.constant dense<0.000000e+00> : vector<72x8xf32>
    %68 = tpu.matmul %66, %67, %cst_59 {dimension_numbers = #tpu.dot_dimension_numbers<[1], [0], [0], [1], [0, 0, 1, 1], [], []>} : vector<72x5xbf16>, vector<5x8xbf16>, vector<72x8xf32> -> vector<72x8xf32>
    %cst_60 = arith.constant 0.000000e+00 : f32
    %69 = vector.broadcast %cst_60 : f32 to vector<72x8xf32>
    %70 = arith.maximumf %68, %69 : vector<72x8xf32>
    %71 = arith.truncf %70 : vector<72x8xf32> to vector<72x8xbf16>
    %c6 = arith.constant 6 : index
    %c0_61 = arith.constant 0 : index
    %c0_62 = arith.constant 0 : index
    %72 = vector.load %arg4[%c6, %c0_61, %c0_62] : memref<9x8x8xbf16, #tpu.memory_space<vmem>>, vector<1x8x8xbf16>
    %73 = vector.shape_cast %72 : vector<1x8x8xbf16> to vector<8x8xbf16>
    %cst_63 = arith.constant dense<0.000000e+00> : vector<72x8xf32>
    %74 = tpu.matmul %71, %73, %cst_63 {dimension_numbers = #tpu.dot_dimension_numbers<[1], [0], [0], [1], [0, 0, 1, 1], [], []>} : vector<72x8xbf16>, vector<8x8xbf16>, vector<72x8xf32> -> vector<72x8xf32>
    %75 = arith.addf %64, %74 : vector<72x8xf32>
    %c0_64 = arith.constant 0 : index
    %c99 = arith.constant 99 : index
    %c0_65 = arith.constant 0 : index
    %76 = vector.load %arg2[%c0_64, %c99, %c0_65] : memref<1x360x5xbf16, #tpu.memory_space<vmem>>, vector<1x72x5xbf16>
    %77 = vector.shape_cast %76 : vector<1x72x5xbf16> to vector<72x5xbf16>
    %c0_66 = arith.constant 0 : index
    %c0_67 = arith.constant 0 : index
    %78 = vector.load %arg3[%c0_66, %c0_67] : memref<5x8xbf16, #tpu.memory_space<vmem>>, vector<5x8xbf16>
    %cst_68 = arith.constant dense<0.000000e+00> : vector<72x8xf32>
    %79 = tpu.matmul %77, %78, %cst_68 {dimension_numbers = #tpu.dot_dimension_numbers<[1], [0], [0], [1], [0, 0, 1, 1], [], []>} : vector<72x5xbf16>, vector<5x8xbf16>, vector<72x8xf32> -> vector<72x8xf32>
    %cst_69 = arith.constant 0.000000e+00 : f32
    %80 = vector.broadcast %cst_69 : f32 to vector<72x8xf32>
    %81 = arith.maximumf %79, %80 : vector<72x8xf32>
    %82 = arith.truncf %81 : vector<72x8xf32> to vector<72x8xbf16>
    %c7 = arith.constant 7 : index
    %c0_70 = arith.constant 0 : index
    %c0_71 = arith.constant 0 : index
    %83 = vector.load %arg4[%c7, %c0_70, %c0_71] : memref<9x8x8xbf16, #tpu.memory_space<vmem>>, vector<1x8x8xbf16>
    %84 = vector.shape_cast %83 : vector<1x8x8xbf16> to vector<8x8xbf16>
    %cst_72 = arith.constant dense<0.000000e+00> : vector<72x8xf32>
    %85 = tpu.matmul %82, %84, %cst_72 {dimension_numbers = #tpu.dot_dimension_numbers<[1], [0], [0], [1], [0, 0, 1, 1], [], []>} : vector<72x8xbf16>, vector<8x8xbf16>, vector<72x8xf32> -> vector<72x8xf32>
    %86 = arith.addf %75, %85 : vector<72x8xf32>
    %c0_73 = arith.constant 0 : index
    %c10 = arith.constant 10 : index
    %c0_74 = arith.constant 0 : index
    %87 = vector.load %arg2[%c0_73, %c10, %c0_74] : memref<1x360x5xbf16, #tpu.memory_space<vmem>>, vector<1x72x5xbf16>
    %88 = vector.shape_cast %87 : vector<1x72x5xbf16> to vector<72x5xbf16>
    %c0_75 = arith.constant 0 : index
    %c0_76 = arith.constant 0 : index
    %89 = vector.load %arg3[%c0_75, %c0_76] : memref<5x8xbf16, #tpu.memory_space<vmem>>, vector<5x8xbf16>
    %cst_77 = arith.constant dense<0.000000e+00> : vector<72x8xf32>
    %90 = tpu.matmul %88, %89, %cst_77 {dimension_numbers = #tpu.dot_dimension_numbers<[1], [0], [0], [1], [0, 0, 1, 1], [], []>} : vector<72x5xbf16>, vector<5x8xbf16>, vector<72x8xf32> -> vector<72x8xf32>
    %cst_78 = arith.constant 0.000000e+00 : f32
    %91 = vector.broadcast %cst_78 : f32 to vector<72x8xf32>
    %92 = arith.maximumf %90, %91 : vector<72x8xf32>
    %93 = arith.truncf %92 : vector<72x8xf32> to vector<72x8xbf16>
    %c8 = arith.constant 8 : index
    %c0_79 = arith.constant 0 : index
    %c0_80 = arith.constant 0 : index
    %94 = vector.load %arg4[%c8, %c0_79, %c0_80] : memref<9x8x8xbf16, #tpu.memory_space<vmem>>, vector<1x8x8xbf16>
    %95 = vector.shape_cast %94 : vector<1x8x8xbf16> to vector<8x8xbf16>
    %cst_81 = arith.constant dense<0.000000e+00> : vector<72x8xf32>
    %96 = tpu.matmul %93, %95, %cst_81 {dimension_numbers = #tpu.dot_dimension_numbers<[1], [0], [0], [1], [0, 0, 1, 1], [], []>} : vector<72x8xbf16>, vector<8x8xbf16>, vector<72x8xf32> -> vector<72x8xf32>
    %97 = arith.addf %86, %96 : vector<72x8xf32>
    %c0_82 = arith.constant 0 : index
    %c0_83 = arith.constant 0 : index
    %98 = vector.load %arg5[%c0_82, %c0_83] : memref<1x8xf32, #tpu.memory_space<vmem>>, vector<1x8xf32>
    %99 = vector.broadcast %98 : vector<1x8xf32> to vector<72x8xf32>
    %100 = arith.addf %97, %99 : vector<72x8xf32>
    %cst_84 = arith.constant 0.000000e+00 : f32
    %101 = vector.broadcast %cst_84 : f32 to vector<72x8xf32>
    %102 = arith.maximumf %100, %101 : vector<72x8xf32>
    %103 = arith.truncf %102 : vector<72x8xf32> to vector<72x8xbf16>
    %c0_85 = arith.constant 0 : index
    %c0_86 = arith.constant 0 : index
    %104 = vector.load %arg6[%c0_85, %c0_86] : memref<8x128xbf16, #tpu.memory_space<vmem>>, vector<8x128xbf16>
    %cst_87 = arith.constant dense<0.000000e+00> : vector<72x128xf32>
    %105 = tpu.matmul %103, %104, %cst_87 {dimension_numbers = #tpu.dot_dimension_numbers<[1], [0], [0], [1], [0, 0, 1, 1], [], []>} : vector<72x8xbf16>, vector<8x128xbf16>, vector<72x128xf32> -> vector<72x128xf32>
    %c0_88 = arith.constant 0 : index
    %c0_89 = arith.constant 0 : index
    %106 = vector.load %arg7[%c0_88, %c0_89] : memref<5x128xbf16, #tpu.memory_space<vmem>>, vector<5x128xbf16>
    %cst_90 = arith.constant dense<0.000000e+00> : vector<72x128xf32>
    %107 = tpu.matmul %44, %106, %cst_90 {dimension_numbers = #tpu.dot_dimension_numbers<[1], [0], [0], [1], [0, 0, 1, 1], [], []>} : vector<72x5xbf16>, vector<5x128xbf16>, vector<72x128xf32> -> vector<72x128xf32>
    %108 = arith.addf %105, %107 : vector<72x128xf32>
    %c0_91 = arith.constant 0 : index
    %c0_92 = arith.constant 0 : index
    %109 = vector.load %arg8[%c0_91, %c0_92] : memref<1x128xf32, #tpu.memory_space<vmem>>, vector<1x128xf32>
    %110 = vector.broadcast %109 : vector<1x128xf32> to vector<72x128xf32>
    %111 = arith.addf %108, %110 : vector<72x128xf32>
    %c0_93 = arith.constant 0 : index
    %c0_94 = arith.constant 0 : index
    %c0_95 = arith.constant 0 : index
    %112 = vector.load %arg9[%c0_93, %c0_94, %c0_95] : memref<1x72x128xf32, #tpu.memory_space<vmem>>, vector<1x72x128xf32>
    %113 = vector.shape_cast %112 : vector<1x72x128xf32> to vector<72x128xf32>
    %114 = vector.shape_cast %111 : vector<72x128xf32> to vector<1x72x128xf32>
    tpu.vector_store %arg9[%c0_93, %c0_94, %c0_95], %114 {strides = array<i32>} : memref<1x72x128xf32, #tpu.memory_space<vmem>>, vector<1x72x128xf32>,
    return
  }
  func.func @transform_0(%arg0: i32, %arg1: i32) -> (i32, i32, i32) {
    %c0_i32 = arith.constant 0 : i32
    %c0_i32_0 = arith.constant 0 : i32
    %c0_i32_1 = arith.constant 0 : i32
    return %arg0, %c0_i32, %c0_i32_0 : i32, i32, i32
  }
  func.func @transform_1(%arg0: i32, %arg1: i32) -> (i32, i32) {
    %c0_i32 = arith.constant 0 : i32
    %c0_i32_0 = arith.constant 0 : i32
    %c0_i32_1 = arith.constant 0 : i32
    return %c0_i32, %c0_i32_0 : i32, i32
  }
  func.func @transform_2(%arg0: i32, %arg1: i32) -> (i32, i32, i32) {
    %c0_i32 = arith.constant 0 : i32
    %c0_i32_0 = arith.constant 0 : i32
    %c0_i32_1 = arith.constant 0 : i32
    %c0_i32_2 = arith.constant 0 : i32
    return %c0_i32, %c0_i32_0, %c0_i32_1 : i32, i32, i32
  }
  func.func @transform_3(%arg0: i32, %arg1: i32) -> (i32, i32) {
    %c0_i32 = arith.constant 0 : i32
    %c0_i32_0 = arith.constant 0 : i32
    %c0_i32_1 = arith.constant 0 : i32
    return %c0_i32, %c0_i32_0 : i32, i32
  }
  func.func @transform_4(%arg0: i32, %arg1: i32) -> (i32, i32) {
    %c0_i32 = arith.constant 0 : i32
    %c0_i32_0 = arith.constant 0 : i32
    %c0_i32_1 = arith.constant 0 : i32
    return %c0_i32, %c0_i32_0 : i32, i32
  }
  func.func @transform_5(%arg0: i32, %arg1: i32) -> (i32, i32) {
    %c0_i32 = arith.constant 0 : i32
    %c0_i32_0 = arith.constant 0 : i32
    %c0_i32_1 = arith.constant 0 : i32
    return %c0_i32, %c0_i32_0 : i32, i32
  }
  func.func @transform_6(%arg0: i32, %arg1: i32) -> (i32, i32) {
    %c0_i32 = arith.constant 0 : i32
    %c0_i32_0 = arith.constant 0 : i32
    %c0_i32_1 = arith.constant 0 : i32
    return %c0_i32, %c0_i32_0 : i32, i32
  }
  func.func @transform_7(%arg0: i32, %arg1: i32) -> (i32, i32, i32) {
    %c0_i32 = arith.constant 0 : i32
    %c0_i32_0 = arith.constant 0 : i32
    return %arg0, %arg1, %c0_i32 : i32, i32, i32
  }
}

</mosaic_0001>

<bundles_post_ra>
// kernel: _lambda_.1
= control target key start
LH: loop header
LB: loop body
LE: loop exit
PB: predicated region body
PF: predicated region fallthrough
CT: control target
= control target key end

     0   :  { %s2462_s24 = smov 0   ;;  %s2464_s25 = smov 0   ;;  %s2926_s0 = inlined_call_operand.vmem [shape: bf16[2,360,5], index: 0, kind: input, shape index: {}]   ;;  %s2927_s1 = inlined_call_operand.vmem [shape: bf16[5,8], index: 1, kind: input, shape index: {}]   ;;  %s2928_s2 = inlined_call_operand.vmem [shape: bf16[9,8,8], index: 2, kind: input, shape index: {}]   ;;  %s2929_s3 = inlined_call_operand.vmem [shape: f32[1,8], index: 3, kind: input, shape index: {}]   ;;  %s2930_s4 = inlined_call_operand.vmem [shape: bf16[8,128], index: 4, kind: input, shape index: {}]   ;;  %s2931_s5 = inlined_call_operand.vmem [shape: bf16[5,128], index: 5, kind: input, shape index: {}]   ;;  %s2932_s6 = inlined_call_operand.vmem [shape: f32[1,128], index: 6, kind: input, shape index: {}]   ;;  %s2933_s7 = inlined_call_operand.vmem [shape: f32[2,72,128], index: 7, kind: output, shape index: {}]  }
   0x1   :  { %s2466_s26 = smov 0  }
   0x2 LB: > { %s29_s27 = sadd.s32 1, %s2415_s25  ;;  %p2092_p0 = scmp.ge.s32.totalorder %s2419_s26, 1  ;;  %s2419_s26 = sphi %s2466_s26, %s17_s26   ;;  %s2415_s25 = sphi %s2464_s25, %s2935_s25   ;;  %s2411_s24 = sphi %s2462_s24, %s2934_s24  }
   0x3   : > { %p31_p1 = scmp.ge.s32.totalorder %s29_s27, 2  ;;  %p251_p2 = scmp.lt.s32.totalorder %s2419_s26, 3 }
   0x5   : > { %s2937_s27 = smov (%p31_p1, %s29_s27), 0  ;;  %p252_p3 = pnand %p2092_p0, %p251_p2 }
   0x6   : > { %p287_p4 = scmp.lt.s32.totalorder (!%p252_p3), %s2411_s24, 1 }
   0x7   : > { %255 = sbr.rel (%p252_p3) target bundleno = 898 (0x382), region = 48 }
   0xc   : > { %v312_v0 = vld [vmem:[%s2927_s1] sm:$0x7]  ;;  %vm352_vm0 = vcmask 1041408   ;;  %vm353_vm1 = vcmask 1042432   ;;  %v2421_v1 = vmov 65535   ;;  %s2939_s24 = smov (!%p287_p4, %s2411_s24), 1 }
   0xd   : > { %v354_v2 = vsel %vm352_vm0, 4294967295, %v2421_v1  ;;  %s2365_s30 = smul.u32 180, %s2939_s24  ;;  %vm336_vm2 = vcmask 39936   ;;  %vm442_vm3 = vcmask 1046528   ;;  %vm655_vm4 = vsmask.f32 7424 }
   0xe   : > { %v2483_v3 = vsel %vm353_vm1, %v354_v2, 0  ;;  %v2141_v50 = vld [vmem:[%s2928_s2 + $0x4] sm:$0xf]  ;;  %vm532_vm5 = vcmask 1043456   ;;  %v406_v51 = vld [vmem:[%s2928_s2] sm:$0xf] }
   0xf   : > { %v2488_v4 = vand.u32 %v2483_v3, %v312_v0  ;;  %s2496_s10 = scalar_lea.vmem %s2926_s0, %s2365_s30  ;;  %v534_v52 = vsel %vm532_vm5, %v2141_v50, 0  ;;  %v585_v53 = vsel %vm532_vm5, %v406_v51, 0  ;;  %vm516_vm6 = vcmask 64512   ;;  %s2366_s16 = smul.u32 72, %s2939_s24 }
  0x10   : > { %v2333_v5 = vld [vmem:[%s2496_s10] sm:$0xff]  ;;  %v2118_v6 = vld [vmem:[%s2496_s10 + $0x2c] sm:$0xe]  ;;  %v2337_v7 = vld [vmem:[%s2496_s10 + $0x2c] sm:$0xf0]  ;;  %543 = vmatpush.bf16.msra.mxu2 %v534_v52  ;;  %594 = vmatpush.bf16.msra.mxu3 %v585_v53  ;;  %vm1023_vm7 = vcmask 1044480  }
  0x11   : > { %366 = vmatpush.bf16.msra.mxu0 %v2488_v4  ;;  %474 = vmatpush.bf16.msra.mxu1 %v2488_v4  ;;  %v2338_v8 = vld [vmem:[%s2496_s10 + $0x34] sm:$0xff]  ;;  %v2119_v9 = vor.u32 %v2337_v7, %v2118_v6  ;;  %v2339_v13 = vld [vmem:[%s2496_s10 + $0x3c] sm:$0xff]  ;;  %v2334_v14 = vld [vmem:[%s2496_s10 + $0x8] sm:$0xff]  ;;  %vm854_vm8 = vcmask 1045504   ;;  %vm1161_vm9 = vsmask.f32 5376  ;;  %s2906_s21 = scalar_lea.vmem %s2933_s7, %s2366_s16 }
  0x12   : > { %v444_v11 = vrot.slane %v2338_v8, 1  ;;  %v446_v15 = vrot.slane %v2339_v13, 1  ;;  %v2340_v17 = vld [vmem:[%s2496_s10 + $0x44] sm:$0xff]  ;;  %v2335_v18 = vld [vmem:[%s2496_s10 + $0x10] sm:$0xff]  ;;  %v2134_v21 = vld [vmem:[%s2496_s10 + $0x4c] sm:$0xf] }
  0x13   : > { %v443_v10 = vrot.slane %v2119_v9, 1  ;;  %v448_v19 = vrot.slane %v2340_v17, 1  ;;  %v2341_v22 = vld [vmem:[%s2496_s10 + $0x4c] sm:$0x10]  ;;  %v2336_v24 = vld [vmem:[%s2496_s10 + $0x18] sm:$0xff]  ;;  %v2342_v30 = vld [vmem:[%s2496_s10] sm:$0xff] }
  0x14   : > { %2111 = vmatmul.msk.bf16.vlgmr.msra.gmra.mxu0 %vm336_vm2, %v2333_v5  ;;  %v447_v16 = vsel %vm442_vm3, %v444_v11, %v446_v15  ;;  %v2135_v23 = vor.u32 %v2341_v22, %v2134_v21  ;;  %v311_v27 = vld [vmem:[%s2496_s10 + $0x20] sm:$0xf]  ;;  %v2343_v31 = vld [vmem:[%s2496_s10 + $0x8] sm:$0xff]  ;;  %v659_v32 = vshll.u32 %v2342_v30, 16  ;;  %v657_v33 = vshrl.u32 %v2342_v30, 16  ;;  %v2344_v39 = vld [vmem:[%s2496_s10 + $0x10] sm:$0xff]  ;;  %886 = vmatpush.bf16.msrb.mxu2 %v2488_v4 }
  0x15   : > { %717 = vmatpush.bf16.msrb.mxu0 %v2488_v4  ;;  %v445_v12 = vsel %vm442_vm3, %v443_v10, %v444_v11  ;;  %v449_v20 = vsel %vm442_vm3, %v446_v15, %v448_v19  ;;  %v330_v28 = vunpack.c.l.b16 %v311_v27  ;;  %v664_v35 = vshll.u32 %v2343_v31, 16  ;;  %v2345_v45 = vld [vmem:[%s2496_s10 + $0x18] sm:$0xff]  ;;  %v2170_v55 = vld [vmem:[%s2496_s10 + $0x20] sm:$0xf]  ;;  %v2346_v56 = vld [vmem:[%s2496_s10 + $0x20] sm:$0x10] }
  0x16   : > { %2136 = vmatmul.msk.bf16.vlgmr.msra.gmra.mxu1 %vm336_vm2, %v445_v12  ;;  %v450_v25 = vrot.slane %v2135_v23, 1  ;;  %v661_v34 = vrot.slane %v659_v32, 1  ;;  %v668_v40 = vshrl.u32 %v2343_v31, 16  ;;  %v672_v41 = vshll.u32 %v2344_v39, 16 }
  0x17   : > { %v335_v29 = vpack.c.b16 %v330_v28, %v330_v28  ;;  %v666_v37 = vrot.slane %v664_v35, 1  ;;  %v676_v46 = vshrl.u32 %v2344_v39, 16  ;;  %v680_v47 = vshll.u32 %v2345_v45, 16 }
  0x18   : > { %v451_v26 = vsel %vm442_vm3, %v448_v19, %v450_v25  ;;  %v662_v36 = vor.u32 %v661_v34, %v657_v33  ;;  %v674_v43 = vrot.slane %v672_v41, 1  ;;  %v2171_v57 = vor.u32 %v2346_v56, %v2170_v55  ;;  %v2351_v41 = vld [vmem:[%s2496_s10 + $0x84] sm:$0xf0] }
  0x19   : > { %1055 = vmatpush.bf16.msra.mxu0 %v2488_v4  ;;  %v670_v42 = vor.u32 %v668_v40, %v666_v37  ;;  %v682_v49 = vrot.slane %v680_v47, 1  ;;  %v684_v58 = vshrl.u32 %v2345_v45, 16  ;;  %v2212_v40 = vld [vmem:[%s2496_s10 + $0x84] sm:$0x8]  ;;  %vm1563_vm10 = vsmask.f32 6400 }
  0x1a   : > { %v667_v38 = vsel %vm655_vm4, %v662_v36, %v666_v37  ;;  %v678_v48 = vor.u32 %v676_v46, %v674_v43  ;;  %v688_v59 = vshll.u32 %v2171_v57, 16  ;;  %v692_v7 = vshrl.u32 %v2171_v57, 16  ;;  %v2177_v37 = vld [vmem:[%s2928_s2 + $0x8] sm:$0xf] }
  0x1b   : > { %v675_v44 = vsel %vm655_vm4, %v670_v42, %v674_v43  ;;  %v686_v60 = vor.u32 %v684_v58, %v682_v49  ;;  %v775_v39 = vsel %vm532_vm5, %v2177_v37, 0  ;;  %v2352_v42 = vld [vmem:[%s2496_s10 + $0x8c] sm:$0xff]  ;;  %v2213_v43 = vor.u32 %v2351_v41, %v2212_v40  ;;  %v2353_v58 = vld [vmem:[%s2496_s10 + $0x94] sm:$0xff]  ;;  %v828_v37 = vld [vmem:[%s2496_s10 + $0x7c] sm:$0x3] }
  0x1c   : > { %v683_v54 = vsel %vm655_vm4, %v678_v48, %v682_v49  ;;  %v690_v61 = vrot.slane %v688_v59, 1  ;;  %784 = vmatpush.bf16.msrb.mxu1 %v775_v39  ;;  %v1025_v47 = vrot.slane %v2352_v42, 3  ;;  %v2204_v39 = vld [vmem:[%s2928_s2 + $0xc] sm:$0xf]  ;;  %v848_v41 = vunpack.c.l.b16 %v828_v37 }
  0x1d   : > { %v1024_v46 = vrot.slane %v2213_v43, 3  ;;  %v944_v42 = vsel %vm532_vm5, %v2204_v39, 0  ;;  %v1330_v43 = vld [vmem:[%s2496_s10 + $0x4] sm:$0xff]  }
  0x1e   : > { %v691_v63 = vsel %vm655_vm4, %v686_v60, %v690_v61  ;;  %v694_v12 = vor.u32 %v692_v7, %v690_v61  ;;  %v1027_v60 = vrot.slane %v2353_v58, 3  ;;  %953 = vmatpush.bf16.msrb.mxu3 %v944_v42 }
  0x1f   : > { %v2567_v50 = vsel %vm1023_vm7, %v1024_v46, %v1025_v47 }
  0x24   : > { %2112 = vmatmul.msk.bf16.gmra.mxu0 %vm336_vm2, %v2334_v14 }
  0x26   : > { %2137 = vmatmul.msk.bf16.gmra.mxu1 %vm336_vm2, %v447_v16 }
  0x34   : > { %2113 = vmatmul.msk.bf16.gmra.mxu0 %vm336_vm2, %v2335_v18 }
  0x36   : > { %2138 = vmatmul.msk.bf16.gmra.mxu1 %vm336_vm2, %v449_v20 }
  0x44   : > { %2114 = vmatmul.msk.bf16.gmra.mxu0 %vm336_vm2, %v2336_v24 }
  0x46   : > { %2139 = vmatmul.msk.bf16.gmra.mxu1 %vm336_vm2, %v451_v26 }
  0x54   : > { %2115 = vmatmul.msk.bf16.gmra.mxu0 %vm336_vm2, %v335_v29 }
  0x56   : > { %2140 = vmatmul.msk.bf16.gmra.mxu1 %vm336_vm2, %v450_v25 }
  0x64   : > { %2172 = vmatmul.msk.bf16.vlgmr.msrb.gmra.mxu0 %vm336_vm2, %v667_v38 }
  0x65   : > { %1426 = vmatpush.bf16.msrb.mxu0 %v2488_v4 }
  0x74   : > { %2173 = vmatmul.msk.bf16.gmra.mxu0 %vm336_vm2, %v675_v44 }
  0x84   : > { %2174 = vmatmul.msk.bf16.gmra.mxu0 %vm336_vm2, %v683_v54 }
  0x91   : > { %v368_v62 = vpop.f32.mrf.mxu0 }
  0x92   : > { %v392_v1 = vmax.f32 %v368_v62, 0.0  ;;  %v2576_v62 = vsel %vm1023_vm7, %v1025_v47, %v1027_v60 }
  0x93   : > { %v476_v0 = vpop.f32.mrf.mxu1 }
  0x94   : > { %2175 = vmatmul.msk.bf16.gmra.mxu0 %vm336_vm2, %v691_v63  ;;  %v500_v9 = vmax.f32 %v476_v0, 0.0  ;;  %v2185_v0 = vld [vmem:[%s2496_s10 + $0x58] sm:$0xc] }
  0x99   : > { %v370_v2 = vpop.f32.mrf.mxu0 }
  0x9a   : > { %v393_v5 = vmax.f32 %v370_v2, 0.0  ;;  %v2584_v2 = vld [vmem:[%s2496_s10 + $0x60] sm:$0xff] }
  0x9b   : > { %v478_v8 = vpop.f32.mrf.mxu1 }
  0x9c   : > { %v401_v6 = vpack.c.bf16 %v393_v5, %v392_v1  ;;  %v501_v10 = vmax.f32 %v478_v8, 0.0  ;;  %v2347_v1 = vld [vmem:[%s2496_s10 + $0x58] sm:$0xf0] }
  0x9d   : > { %v2586_v5 = vor.u32 %v2347_v1, %v2185_v0 }
  0x9e   : > { %2147 = vmatmul.msk.bf16.vlgmr.msra.gmra.mxu3 %vm516_vm6, %v401_v6  ;;  %v509_v11 = vpack.c.bf16 %v501_v10, %v500_v9  ;;  %v856_v10 = vrot.slane %v2584_v2, 2 }
  0x9f   : > { %v855_v9 = vrot.slane %v2586_v5, 2 }
  0xa0   : > { %2142 = vmatmul.msk.bf16.vlgmr.msra.gmra.mxu2 %vm516_vm6, %v509_v11  ;;  %v2354_v11 = vld [vmem:[%s2496_s10 + $0x9c] sm:$0xff] }
  0xa1   : > { %v373_v13 = vpop.f32.mrf.mxu0  ;;  %1228 = vmatpush.bf16.msra.mxu2 %v2488_v4 }
  0xa2   : > { %v394_v15 = vmax.f32 %v373_v13, 0.0  ;;  %v1029_v13 = vrot.slane %v2354_v11, 3 }
  0xa3   : > { %v481_v14 = vpop.f32.mrf.mxu1 }
  0xa4   : > { %2176 = vmatmul.msk.bf16.gmra.mxu0 %vm336_vm2, %v694_v12  ;;  %v502_v20 = vmax.f32 %v481_v14, 0.0  ;;  %v857_v14 = vsel %vm854_vm8, %v855_v9, %v856_v10 }
  0xa9   : > { %v375_v16 = vpop.f32.mrf.mxu0 }
  0xaa   : > { %v395_v17 = vmax.f32 %v375_v16, 0.0 }
  0xab   : > { %v483_v19 = vpop.f32.mrf.mxu1 }
  0xac   : > { %v402_v18 = vpack.c.bf16 %v395_v17, %v394_v15  ;;  %v503_v21 = vmax.f32 %v483_v19, 0.0  ;;  %v2594_v15 = vsel %vm1023_vm7, %v1027_v60, %v1029_v13  ;;  %v2601_v17 = vld [vmem:[%s2496_s10 + $0x68] sm:$0xff] }
  0xae   : > { %2148 = vmatmul.msk.bf16.gmra.mxu3 %vm516_vm6, %v402_v18  ;;  %v510_v22 = vpack.c.bf16 %v503_v21, %v502_v20  ;;  %v2228_v21 = vld [vmem:[%s2496_s10 + $0xa4] sm:$0xf] }
  0xb0   : > { %2143 = vmatmul.msk.bf16.gmra.mxu2 %vm516_vm6, %v510_v22  ;;  %v2355_v22 = vld [vmem:[%s2496_s10 + $0xa4] sm:$0x70] }
  0xb1   : > { %v378_v23 = vpop.f32.mrf.mxu0 }
  0xb2   : > { %v396_v25 = vmax.f32 %v378_v23, 0.0  ;;  %v858_v23 = vrot.slane %v2601_v17, 2 }
  0xb3   : > { %v486_v24 = vpop.f32.mrf.mxu1 }
  0xb4   : > { %v504_v30 = vmax.f32 %v486_v24, 0.0  ;;  %2230 = vmatmul.msk.bf16.vlgmr.msra.gmra.mxu0 %vm336_vm2, %v2567_v50  ;;  %v2229_v24 = vor.u32 %v2355_v22, %v2228_v21  ;;  %v1163_v22 = vshrl.u32 %v2586_v5, 16 }
  0xb5   : > { %1767 = vmatpush.bf16.msra.mxu0 %v2488_v4 }
  0xb9   : > { %v380_v26 = vpop.f32.mrf.mxu0 }
  0xba   : > { %v397_v27 = vmax.f32 %v380_v26, 0.0  ;;  %v2606_v26 = vrot.slane %v2229_v24, 3  ;;  %v1171_v24 = vshrl.u32 %v2584_v2, 16 }
  0xbb   : > { %v488_v29 = vpop.f32.mrf.mxu1 }
  0xbc   : > { %v403_v28 = vpack.c.bf16 %v397_v27, %v396_v25  ;;  %v505_v31 = vmax.f32 %v488_v29, 0.0  ;;  %v2612_v27 = vsel %vm1023_vm7, %v1029_v13, %v2606_v26  ;;  %v2618_v29 = vld [vmem:[%s2496_s10 + $0x70] sm:$0xff] }
  0xbe   : > { %2149 = vmatmul.msk.bf16.gmra.mxu3 %vm516_vm6, %v403_v28  ;;  %v511_v32 = vpack.c.bf16 %v505_v31, %v504_v30 }
  0xc0   : > { %2144 = vmatmul.msk.bf16.gmra.mxu2 %vm516_vm6, %v511_v32 }
  0xc1   : > { %v383_v33 = vpop.f32.mrf.mxu0 }
  0xc2   : > { %v398_v35 = vmax.f32 %v383_v33, 0.0  ;;  %v860_v33 = vrot.slane %v2618_v29, 2 }
  0xc3   : > { %v491_v34 = vpop.f32.mrf.mxu1 }
  0xc4   : > { %v506_v48 = vmax.f32 %v491_v34, 0.0  ;;  %2231 = vmatmul.msk.bf16.gmra.mxu0 %vm336_vm2, %v2576_v62 }
  0xc9   : > { %v385_v36 = vpop.f32.mrf.mxu0 }
  0xca   : > { %v399_v38 = vmax.f32 %v385_v36, 0.0  ;;  %v2624_v36 = vld [vmem:[%s2496_s10 + $0x78] sm:$0xf] }
  0xcb   : > { %v493_v45 = vpop.f32.mrf.mxu1  ;;  %v847_v40 = vunpack.c.l.b16 %v2624_v36 }
  0xcc   : > { %v404_v44 = vpack.c.bf16 %v399_v38, %v398_v35  ;;  %v507_v49 = vmax.f32 %v493_v45, 0.0  ;;  %v861_v35 = vsel %vm854_vm8, %v858_v23, %v860_v33  ;;  %v2235_v45 = vld [vmem:[%s2928_s2 + $0x10] sm:$0xf] }
  0xcd   : > { %v853_v46 = vpack.c.b16 %v848_v41, %v847_v40  ;;  %v1113_v47 = vsel %vm532_vm5, %v2235_v45, 0 }
  0xce   : > { %2150 = vmatmul.msk.bf16.gmra.mxu3 %vm516_vm6, %v404_v44  ;;  %v512_v51 = vpack.c.bf16 %v507_v49, %v506_v48  ;;  %v2637_v44 = vld [vmem:[%s2496_s10 + $0x4] sm:$0xf0]  ;;  %1122 = vmatpush.bf16.msra.mxu1 %v1113_v47  ;;  %v1180_v47 = vshrl.u32 %v2601_v17, 16 }
  0xd0   : > { %2145 = vmatmul.msk.bf16.gmra.mxu2 %vm516_vm6, %v512_v51  ;;  %v2646_v51 = vld [vmem:[%s2496_s10 + $0xc] sm:$0xff] }
  0xd1   : > { %v388_v52 = vpop.f32.mrf.mxu0  ;;  %v1377_v13 = vshrl.u32 %v2646_v51, 16 }
  0xd2   : > { %v400_v54 = vmax.f32 %v388_v52, 0.0  ;;  %v1368_v52 = vshll.u32 %v1330_v43, 16 }
  0xd3   : > { %v496_v53 = vpop.f32.mrf.mxu1 }
  0xd4   : > { %v405_v56 = vpack.c.bf16 %v400_v54, %v400_v54  ;;  %v508_v57 = vmax.f32 %v496_v53, 0.0  ;;  %2232 = vmatmul.msk.bf16.gmra.mxu0 %vm336_vm2, %v2594_v15  ;;  %v862_v54 = vrot.slane %v853_v46, 2 }
  0xd6   : > { %v513_v61 = vpack.c.bf16 %v508_v57, %v508_v57  ;;  %v1373_v57 = vshll.u32 %v2646_v51, 16 }
  0xd8   : > { %v1375_v60 = vrot.slane %v1373_v57, 1 }
  0xd9   : > { %v390_v55 = vpop.f32.mrf.mxu0 }
  0xda   : > { %v1366_v55 = vshrl.u32 %v1330_v43, 16 }
  0xdb   : > { %v498_v59 = vpop.f32.mrf.mxu1 }
  0xde   : > { %2151 = vmatmul.msk.bf16.gmra.mxu3 %vm516_vm6, %v405_v56  ;;  %v1370_v56 = vrot.slane %v1368_v52, 1 }
  0xe0   : > { %2146 = vmatmul.msk.bf16.gmra.mxu2 %vm516_vm6, %v513_v61  ;;  %v1371_v59 = vor.u32 %v1370_v56, %v1366_v55  ;;  %v863_v61 = vsel %vm854_vm8, %v860_v33, %v862_v54  ;;  %v2266_v55 = vld [vmem:[%s2496_s10 + $0x24] sm:$0xf]  ;;  %v2359_v56 = vld [vmem:[%s2496_s10 + $0x24] sm:$0x10] }
  0xe1   : > { %v719_v63 = vpop.f32.mrf.mxu0 }
  0xe2   : > { %v743_v6 = vmax.f32 %v719_v63, 0.0  ;;  %v1376_v63 = vsel %vm655_vm4, %v1371_v59, %v1375_v60 }
  0xe4   : > { %2233 = vmatmul.msk.bf16.gmra.mxu0 %vm336_vm2, %v2612_v27 }
  0xe9   : > { %v721_v7 = vpop.f32.mrf.mxu0 }
  0xea   : > { %v744_v8 = vmax.f32 %v721_v7, 0.0 }
  0xec   : > { %v752_v12 = vpack.c.bf16 %v744_v8, %v743_v6 }
  0xee   : > { %2178 = vmatmul.msk.bf16.vlgmr.msrb.gmra.mxu1 %vm516_vm6, %v752_v12 }
  0xf0   : > { %2199 = vmatmul.msk.bf16.vlgmr.msrb.gmra.mxu2 %vm336_vm2, %v857_v14 }
  0xf1   : > { %v724_v16 = vpop.f32.mrf.mxu0  ;;  %1630 = vmatpush.bf16.msrb.mxu2 %v2488_v4  ;;  %v859_v4 = vsel %vm854_vm8, %v856_v10, %v858_v23  ;;  %v2659_v10 = vld [vmem:[%s2496_s10 + $0x14] sm:$0xff]  ;;  %v1166_v23 = vshll.u32 %v2586_v5, 16 }
  0xf2   : > { %v745_v18 = vmax.f32 %v724_v16, 0.0  ;;  %v1381_v14 = vshll.u32 %v2659_v10, 16  ;;  %v1385_v39 = vshrl.u32 %v2659_v10, 16 }
  0xf4   : > { %2234 = vmatmul.msk.bf16.gmra.mxu0 %vm336_vm2, %v2606_v26 }
  0xf9   : > { %v726_v19 = vpop.f32.mrf.mxu0 }
  0xfa   : > { %v746_v20 = vmax.f32 %v726_v19, 0.0  ;;  %v1383_v19 = vrot.slane %v1381_v14, 1 }
  0xfc   : > { %v753_v25 = vpack.c.bf16 %v746_v20, %v745_v18  ;;  %v1379_v18 = vor.u32 %v1377_v13, %v1375_v60  ;;  %v1387_v41 = vor.u32 %v1385_v39, %v1383_v19  ;;  %v1192_v13 = vshll.u32 %v2618_v29, 16 }
  0xfe   : > { %2179 = vmatmul.msk.bf16.gmra.mxu1 %vm516_vm6, %v753_v25  ;;  %v1384_v20 = vsel %vm655_vm4, %v1379_v18, %v1383_v19  ;;  %v1174_v25 = vshll.u32 %v2584_v2, 16 }
 0x100   : > { %2200 = vmatmul.msk.bf16.gmra.mxu2 %vm336_vm2, %v859_v4  ;;  %v1176_v33 = vrot.slane %v1174_v25, 3 }
 0x101   : > { %v729_v28 = vpop.f32.mrf.mxu0 }
 0x102   : > { %v747_v30 = vmax.f32 %v729_v28, 0.0 }
 0x104   : > { %2268 = vmatmul.msk.bf16.vlgmr.msrb.gmra.mxu0 %vm336_vm2, %v1376_v63 }
 0x109   : > { %v731_v31 = vpop.f32.mrf.mxu0 }
 0x10a   : > { %v748_v32 = vmax.f32 %v731_v31, 0.0  ;;  %v1168_v31 = vrot.slane %v1166_v23, 3  ;;  %v1194_v23 = vrot.slane %v1192_v13, 3 }
 0x10c   : > { %v754_v34 = vpack.c.bf16 %v748_v32, %v747_v30  ;;  %v1165_v30 = vrot.slane %v1163_v22, 2  ;;  %v1173_v32 = vrot.slane %v1171_v24, 2  ;;  %v1157_v24 = vld [vmem:[%s2496_s10 + $0x7c] sm:$0x7] }
 0x10e   : > { %2180 = vmatmul.msk.bf16.gmra.mxu1 %vm516_vm6, %v754_v34  ;;  %v1169_v37 = vor.u32 %v1168_v31, %v1165_v30  ;;  %v1159_v30 = vunpack.c.l.b16 %v1157_v24  ;;  %v2281_v24 = vld [vmem:[%s2496_s10 + $0x30] sm:$0xe] }
 0x110   : > { %2201 = vmatmul.msk.bf16.gmra.mxu2 %vm336_vm2, %v861_v35  ;;  %v2678_v35 = vld [vmem:[%s2496_s10 + $0x1c] sm:$0xff] }
 0x111   : > { %v734_v38 = vpop.f32.mrf.mxu0  ;;  %v1389_v5 = vshll.u32 %v2678_v35, 16  ;;  %v1393_v60 = vshrl.u32 %v2678_v35, 16 }
 0x112   : > { %v749_v48 = vmax.f32 %v734_v38, 0.0  ;;  %v1177_v38 = vor.u32 %v1176_v33, %v1173_v32 }
 0x113   : > { %v1391_v42 = vrot.slane %v1389_v5, 1 }
 0x114   : > { %2269 = vmatmul.msk.bf16.gmra.mxu0 %vm336_vm2, %v1384_v20  ;;  %v1178_v43 = vsel %vm1161_vm9, %v1169_v37, %v1177_v38 }
 0x115   : > { %v1392_v45 = vsel %vm655_vm4, %v1387_v41, %v1391_v42  ;;  %v2246_v41 = vld [vmem:[%s2928_s2 + $0x14] sm:$0xf] }
 0x119   : > { %v736_v49 = vpop.f32.mrf.mxu0 }
 0x11a   : > { %v750_v53 = vmax.f32 %v736_v49, 0.0 }
 0x11c   : > { %v755_v58 = vpack.c.bf16 %v750_v53, %v749_v48  ;;  %v1183_v48 = vshll.u32 %v2601_v17, 16  ;;  %v1182_v53 = vrot.slane %v1180_v47, 2  ;;  %v1395_v17 = vor.u32 %v1393_v60, %v1391_v42 }
 0x11e   : > { %2181 = vmatmul.msk.bf16.gmra.mxu1 %vm516_vm6, %v755_v58  ;;  %v2696_v58 = vor.u32 %v2359_v56, %v2266_v55 }
 0x120   : > { %2202 = vmatmul.msk.bf16.gmra.mxu2 %vm336_vm2, %v863_v61  ;;  %v1397_v61 = vshll.u32 %v2696_v58, 16  ;;  %v1401_v32 = vshrl.u32 %v2696_v58, 16 }
 0x121   : > { %v596_v0 = vpop.f32.mrf.mxu3  ;;  %v739_v1 = vpop.f32.mrf.mxu0 }
 0x122   : > { %v751_v8 = vmax.f32 %v739_v1, 0.0  ;;  %v1399_v1 = vrot.slane %v1397_v61, 1 }
 0x123   : > { %v545_v6 = vpop.f32.mrf.mxu2 }
 0x124   : > { %v2654_v7 = vadd.f32 %v596_v0, %v545_v6  ;;  %v756_v12 = vpack.c.bf16 %v751_v8, %v751_v8  ;;  %2270 = vmatmul.msk.bf16.gmra.mxu0 %vm336_vm2, %v1392_v45  ;;  %v1400_v8 = vsel %vm655_vm4, %v1395_v17, %v1399_v1  ;;  %v1403_v37 = vor.u32 %v1401_v32, %v1399_v1 }
 0x125   : > { %v1286_v45 = vsel %vm532_vm5, %v2246_v41, 0  ;;  %v1739_v32 = vrot.slane %v2659_v10, 1 }
 0x126   : > { %1295 = vmatpush.bf16.msra.mxu3 %v1286_v45 }
 0x129   : > { %v2656_v9 = vpop.f32.mrf.mxu3  ;;  %v741_v11 = vpop.f32.mrf.mxu0 }
 0x12b   : > { %v2663_v16 = vpop.f32.mrf.mxu2 }
 0x12e   : > { %2182 = vmatmul.msk.bf16.gmra.mxu1 %vm516_vm6, %v756_v12  ;;  %v1189_v12 = vshrl.u32 %v2618_v29, 16 }
 0x130   : > { %2203 = vmatmul.msk.bf16.gmra.mxu2 %vm336_vm2, %v862_v54  ;;  %v1185_v54 = vrot.slane %v1183_v48, 3  ;;  %v1191_v22 = vrot.slane %v1189_v12, 2  ;;  %v1737_v12 = vrot.slane %v2646_v51, 1 }
 0x131   : > { %v601_v21 = vpop.f32.mrf.mxu3  ;;  %v1057_v0 = vpop.f32.mrf.mxu0 }
 0x132   : > { %v1186_v59 = vor.u32 %v1185_v54, %v1182_v53  ;;  %v1081_v14 = vmax.f32 %v1057_v0, 0.0  ;;  %v1195_v31 = vor.u32 %v1194_v23, %v1191_v22 }
 0x133   : > { %v550_v4 = vpop.f32.mrf.mxu2 }
 0x134   : > { %v2673_v28 = vadd.f32 %v601_v21, %v550_v4  ;;  %v1187_v6 = vsel %vm1161_vm9, %v1177_v38, %v1186_v59  ;;  %2271 = vmatmul.msk.bf16.gmra.mxu0 %vm336_vm2, %v1400_v8  ;;  %v1160_v38 = vpack.c.b16 %v1159_v30, %v847_v40  ;;  %v1196_v39 = vsel %vm1161_vm9, %v1186_v59, %v1195_v31  ;;  %v2395_v59 = vld [vmem:[%s2496_s10 + $0x4] sm:$0xe] }
 0x135   : > { %v2396_v17 = vor.u32 %v2395_v59, %v2637_v44 }
 0x136   : > { %v1198_v42 = vshrl.u32 %v1160_v38, 16 }
 0x138   : > { %v1200_v53 = vrot.slane %v1198_v42, 2 }
 0x139   : > { %v2675_v34 = vpop.f32.mrf.mxu3  ;;  %v1059_v19 = vpop.f32.mrf.mxu0 }
 0x13a   : > { %v1082_v21 = vmax.f32 %v1059_v19, 0.0 }
 0x13b   : > { %v2682_v2 = vpop.f32.mrf.mxu2 }
 0x13c   : > { %v1090_v25 = vpack.c.bf16 %v1082_v21, %v1081_v14 }
 0x13e   : > { %2236 = vmatmul.msk.bf16.vlgmr.msra.gmra.mxu1 %vm516_vm6, %v1090_v25  ;;  %v2360_v25 = vld [vmem:[%s2496_s10 + $0x30] sm:$0xf0] }
 0x140   : > { %2241 = vmatmul.msk.bf16.vlgmr.msra.gmra.mxu2 %vm336_vm2, %v1178_v43  ;;  %v1201_v43 = vshll.u32 %v1160_v38, 16  ;;  %v2361_v38 = vld [vmem:[%s2496_s10 + $0x38] sm:$0xff] }
 0x141   : > { %v606_v46 = vpop.f32.mrf.mxu3  ;;  %v1062_v29 = vpop.f32.mrf.mxu0  ;;  %v1573_v45 = vshrl.u32 %v2361_v38, 16 }
 0x142   : > { %v1203_v54 = vrot.slane %v1201_v43, 3 }
 0x143   : > { %v555_v49 = vpop.f32.mrf.mxu2 }
 0x144   : > { %v2690_v52 = vadd.f32 %v606_v46, %v555_v49  ;;  %2272 = vmatmul.msk.bf16.gmra.mxu0 %vm336_vm2, %v1403_v37  ;;  %v1083_v46 = vmax.f32 %v1062_v29, 0.0  ;;  %v2273_v49 = vld [vmem:[%s2928_s2 + $0x18] sm:$0xf]  ;;  %v1204_v0 = vor.u32 %v1203_v54, %v1200_v53  ;;  %v1575_v54 = vrot.slane %v1573_v45, 1 }
 0x145   : > { %v1484_v55 = vsel %vm532_vm5, %v2273_v49, 0 }
 0x146   : > { %1493 = vmatpush.bf16.msrb.mxu1 %v1484_v55  ;;  %v1205_v13 = vsel %vm1161_vm9, %v1195_v31, %v1204_v0 }
 0x149   : > { %v2694_v57 = vpop.f32.mrf.mxu3  ;;  %v1064_v40 = vpop.f32.mrf.mxu0 }
 0x14a   : > { %v1084_v48 = vmax.f32 %v1064_v40, 0.0 }
 0x14b   : > { %v2700_v63 = vpop.f32.mrf.mxu2 }
 0x14c   : > { %v1091_v56 = vpack.c.bf16 %v1084_v48, %v1083_v46  ;;  %v1576_v46 = vshll.u32 %v2361_v38, 16 }
 0x14e   : > { %2237 = vmatmul.msk.bf16.gmra.mxu1 %vm516_vm6, %v1091_v56  ;;  %v1578_v55 = vrot.slane %v1576_v46, 2 }
 0x150   : > { %2242 = vmatmul.msk.bf16.gmra.mxu2 %vm336_vm2, %v1187_v6 }
 0x151   : > { %v611_v11 = vpop.f32.mrf.mxu3  ;;  %v1067_v8 = vpop.f32.mrf.mxu0 }
 0x152   : > { %v1085_v44 = vmax.f32 %v1067_v8, 0.0  ;;  %v1741_v8 = vrot.slane %v2678_v35, 1 }
 0x153   : > { %v560_v18 = vpop.f32.mrf.mxu2 }
 0x154   : > { %v2708_v20 = vadd.f32 %v611_v11, %v560_v18  ;;  %v1736_v11 = vrot.slane %v2396_v17, 1 }
 0x156   : > { %v1738_v14 = vsel %vm442_vm3, %v1736_v11, %v1737_v12 }
 0x157   : > { %2310 = vmatmul.msk.bf16.vlgmr.msra.gmra.mxu0 %vm336_vm2, %v1738_v14  ;;  %v2362_v14 = vld [vmem:[%s2496_s10 + $0x40] sm:$0xff] }
 0x159   : > { %v2711_v4 = vpop.f32.mrf.mxu3  ;;  %v1069_v19 = vpop.f32.mrf.mxu0 }
 0x15a   : > { %v1086_v21 = vmax.f32 %v1069_v19, 0.0 }
 0x15b   : > { %v2715_v33 = vpop.f32.mrf.mxu2 }
 0x15c   : > { %v1092_v22 = vpack.c.bf16 %v1086_v21, %v1085_v44  ;;  %v1742_v44 = vsel %vm442_vm3, %v1739_v32, %v1741_v8  ;;  %v1582_v21 = vshrl.u32 %v2362_v14, 16 }
 0x15e   : > { %2238 = vmatmul.msk.bf16.gmra.mxu1 %vm516_vm6, %v1092_v22  ;;  %v1585_v22 = vshll.u32 %v2362_v14, 16 }
 0x160   : > { %2243 = vmatmul.msk.bf16.gmra.mxu2 %vm336_vm2, %v1196_v39  ;;  %v2282_v39 = vor.u32 %v2360_v25, %v2281_v24  ;;  %v1584_v25 = vrot.slane %v1582_v21, 1 }
 0x161   : > { %v616_v5 = vpop.f32.mrf.mxu3  ;;  %v1072_v31 = vpop.f32.mrf.mxu0 }
 0x162   : > { %v1565_v42 = vshrl.u32 %v2282_v39, 16  ;;  %v1568_v43 = vshll.u32 %v2282_v39, 16  ;;  %v1087_v10 = vmax.f32 %v1072_v31, 0.0  ;;  %v1743_v39 = vrot.slane %v2696_v58, 1 }
 0x163   : > { %v565_v36 = vpop.f32.mrf.mxu2 }
 0x164   : > { %v2726_v47 = vadd.f32 %v616_v5, %v565_v36  ;;  %v1740_v5 = vsel %vm442_vm3, %v1737_v12, %v1739_v32  ;;  %v1567_v49 = vrot.slane %v1565_v42, 1  ;;  %v1570_v53 = vrot.slane %v1568_v43, 2  ;;  %v2363_v43 = vld [vmem:[%s2496_s10 + $0x48] sm:$0xff] }
 0x165   : > { %v1744_v45 = vsel %vm442_vm3, %v1741_v8, %v1743_v39  ;;  %v1594_v58 = vshll.u32 %v2363_v43, 16 }
 0x167   : > { %2311 = vmatmul.msk.bf16.gmra.mxu0 %vm336_vm2, %v1740_v5 }
 0x169   : > { %v618_v60 = vpop.f32.mrf.mxu3  ;;  %v1074_v40 = vpop.f32.mrf.mxu0 }
 0x16a   : > { %v1088_v48 = vmax.f32 %v1074_v40, 0.0  ;;  %v1571_v60 = vor.u32 %v1570_v53, %v1567_v49 }
 0x16b   : > { %v786_v61 = vpop.f32.mrf.mxu1  ;;  %v567_v6 = vpop.f32.mrf.mxu2 }
 0x16c   : > { %v2736_v1 = vadd.f32 %v786_v61, %v2654_v7  ;;  %v1093_v56 = vpack.c.bf16 %v1088_v48, %v1087_v10  ;;  %v1579_v61 = vor.u32 %v1578_v55, %v1575_v54  ;;  %v1591_v10 = vshrl.u32 %v2363_v43, 16 }
 0x16d   : > { %v1596_v54 = vrot.slane %v1594_v58, 2 }
 0x16e   : > { %2239 = vmatmul.msk.bf16.gmra.mxu1 %vm516_vm6, %v1093_v56  ;;  %v1593_v53 = vrot.slane %v1591_v10, 1 }
 0x170   : > { %2244 = vmatmul.msk.bf16.gmra.mxu2 %vm336_vm2, %v1205_v13  ;;  %v1580_v13 = vsel %vm1563_vm10, %v1571_v60, %v1579_v61 }
 0x171   : > { %v1077_v6 = vpop.f32.mrf.mxu0 }
 0x173   : > { %v2743_v18 = vpop.f32.mrf.mxu1  ;;  %v888_v7 = vpop.f32.mrf.mxu2 }
 0x174   : > { %v912_v29 = vmax.f32 %v888_v7, 0.0 }
 0x177   : > { %2312 = vmatmul.msk.bf16.gmra.mxu0 %vm336_vm2, %v1742_v44 }
 0x17b   : > { %v791_v23 = vpop.f32.mrf.mxu1  ;;  %v890_v30 = vpop.f32.mrf.mxu2 }
 0x17c   : > { %v2747_v51 = vadd.f32 %v791_v23, %v2673_v28  ;;  %v913_v37 = vmax.f32 %v890_v30, 0.0  ;;  %v1079_v23 = vpop.f32.mrf.mxu0  ;;  %v1587_v30 = vrot.slane %v1585_v22, 2 }
 0x17e   : > { %v921_v41 = vpack.c.bf16 %v913_v37, %v912_v29  ;;  %v1588_v32 = vor.u32 %v1587_v30, %v1584_v25  ;;  %v2315_v30 = vld [vmem:[%s2928_s2 + $0x20] sm:$0xf] }
 0x180   : > { %2205 = vmatmul.msk.bf16.vlgmr.msrb.gmra.mxu3 %vm516_vm6, %v921_v41  ;;  %2245 = vmatmul.msk.bf16.gmra.mxu2 %vm336_vm2, %v1204_v0  ;;  %v1589_v42 = vsel %vm1563_vm10, %v1579_v61, %v1588_v32  ;;  %v2297_v61 = vld [vmem:[%s2496_s10 + $0x50] sm:$0xf] }
 0x183   : > { %v2757_v28 = vpop.f32.mrf.mxu1  ;;  %v893_v36 = vpop.f32.mrf.mxu2 }
 0x184   : > { %v914_v11 = vmax.f32 %v893_v36, 0.0  ;;  %v1428_v38 = vpop.f32.mrf.mxu0 }
 0x185   : > { %v1452_v36 = vmax.f32 %v1428_v38, 0.0 }
 0x187   : > { %2313 = vmatmul.msk.bf16.gmra.mxu0 %vm336_vm2, %v1744_v45 }
 0x18b   : > { %v796_v59 = vpop.f32.mrf.mxu1  ;;  %v895_v17 = vpop.f32.mrf.mxu2 }
 0x18c   : > { %v2761_v0 = vadd.f32 %v796_v59, %v2690_v52  ;;  %v915_v12 = vmax.f32 %v895_v17, 0.0  ;;  %v1089_v52 = vmax.f32 %v1077_v6, 0.0  ;;  %v1430_v48 = vpop.f32.mrf.mxu0  ;;  %v1597_v59 = vor.u32 %v1596_v54, %v1593_v53  ;;  %v2364_v17 = vld [vmem:[%s2496_s10 + $0x50] sm:$0x30] }
 0x18d   : > { %v1453_v49 = vmax.f32 %v1430_v48, 0.0  ;;  %v2298_v14 = vor.u32 %v2364_v17, %v2297_v61 }
 0x18e   : > { %v922_v7 = vpack.c.bf16 %v915_v12, %v914_v11  ;;  %v1094_v24 = vpack.c.bf16 %v1089_v52, %v1089_v52 }
 0x18f   : > { %v1461_v55 = vpack.c.bf16 %v1453_v49, %v1452_v36  ;;  %v1603_v52 = vshll.u32 %v2298_v14, 16 }
 0x190   : > { %2206 = vmatmul.msk.bf16.gmra.mxu3 %vm516_vm6, %v922_v7  ;;  %2299 = vmatmul.msk.bf16.vlgmr.msrb.gmra.mxu2 %vm336_vm2, %v1580_v13  ;;  %v1598_v13 = vsel %vm1563_vm10, %v1588_v32, %v1597_v59  ;;  %v1600_v7 = vshrl.u32 %v2298_v14, 16 }
 0x191   : > { %2240 = vmatmul.msk.bf16.gmra.mxu1 %vm516_vm6, %v1094_v24  ;;  %v1605_v32 = vrot.slane %v1603_v52, 2 }
 0x193   : > { %v2770_v19 = vpop.f32.mrf.mxu1  ;;  %v898_v35 = vpop.f32.mrf.mxu2 }
 0x194   : > { %v916_v5 = vmax.f32 %v898_v35, 0.0  ;;  %v1433_v8 = vpop.f32.mrf.mxu0 }
 0x195   : > { %v1454_v35 = vmax.f32 %v1433_v8, 0.0 }
 0x197   : > { %2314 = vmatmul.msk.bf16.gmra.mxu0 %vm336_vm2, %v1743_v39 }
 0x19b   : > { %v801_v31 = vpop.f32.mrf.mxu1  ;;  %v900_v37 = vpop.f32.mrf.mxu2 }
 0x19c   : > { %v2774_v29 = vadd.f32 %v801_v31, %v2708_v20  ;;  %v917_v41 = vmax.f32 %v900_v37, 0.0  ;;  %v1435_v24 = vpop.f32.mrf.mxu0  ;;  %v1602_v31 = vrot.slane %v1600_v7, 1  ;;  %v1825_v37 = vsel %vm532_vm5, %v2315_v30, 0 }
 0x19d   : > { %v1455_v25 = vmax.f32 %v1435_v24, 0.0  ;;  %1834 = vmatpush.bf16.msra.mxu1 %v1825_v37 }
 0x19e   : > { %v923_v46 = vpack.c.bf16 %v917_v41, %v916_v5  ;;  %v1606_v39 = vor.u32 %v1605_v32, %v1602_v31 }
 0x19f   : > { %v1462_v38 = vpack.c.bf16 %v1455_v25, %v1454_v35 }
 0x1a0   : > { %2207 = vmatmul.msk.bf16.gmra.mxu3 %vm516_vm6, %v923_v46  ;;  %2300 = vmatmul.msk.bf16.gmra.mxu2 %vm336_vm2, %v1589_v42  ;;  %v1607_v43 = vsel %vm1563_vm10, %v1597_v59, %v1606_v39 }
 0x1a1   : > { %2274 = vmatmul.msk.bf16.vlgmr.msrb.gmra.mxu1 %vm516_vm6, %v1461_v55 }
 0x1a3   : > { %v2783_v20 = vpop.f32.mrf.mxu1  ;;  %v903_v40 = vpop.f32.mrf.mxu2 }
 0x1a4   : > { %v918_v11 = vmax.f32 %v903_v40, 0.0  ;;  %v1438_v42 = vpop.f32.mrf.mxu0 }
 0x1a5   : > { %v1456_v46 = vmax.f32 %v1438_v42, 0.0 }
 0x1ab   : > { %v806_v56 = vpop.f32.mrf.mxu1  ;;  %v905_v6 = vpop.f32.mrf.mxu2 }
 0x1ac   : > { %v2787_v60 = vadd.f32 %v806_v56, %v2726_v47  ;;  %v919_v12 = vmax.f32 %v905_v6, 0.0  ;;  %v2304_v47 = vld [vmem:[%s2928_s2 + $0x1c] sm:$0xf]  ;;  %v1440_v58 = vpop.f32.mrf.mxu0 }
 0x1ad   : > { %v1688_v21 = vsel %vm532_vm5, %v2304_v47, 0  ;;  %v1457_v36 = vmax.f32 %v1440_v58, 0.0 }
 0x1ae   : > { %v924_v44 = vpack.c.bf16 %v919_v12, %v918_v11  ;;  %1697 = vmatpush.bf16.msrb.mxu3 %v1688_v21 }
 0x1af   : > { %v1463_v40 = vpack.c.bf16 %v1457_v36, %v1456_v46 }
 0x1b0   : > { %2208 = vmatmul.msk.bf16.gmra.mxu3 %vm516_vm6, %v924_v44  ;;  %2301 = vmatmul.msk.bf16.gmra.mxu2 %vm336_vm2, %v1598_v13 }
 0x1b1   : > { %2275 = vmatmul.msk.bf16.gmra.mxu1 %vm516_vm6, %v1462_v38 }
 0x1b3   : > { %v808_v22 = vpop.f32.mrf.mxu1  ;;  %v908_v23 = vpop.f32.mrf.mxu2 }
 0x1b4   : > { %v920_v5 = vmax.f32 %v908_v23, 0.0  ;;  %v1443_v49 = vpop.f32.mrf.mxu0 }
 0x1b5   : > { %v1458_v56 = vmax.f32 %v1443_v49, 0.0 }
 0x1b6   : > { %v925_v45 = vpack.c.bf16 %v920_v5, %v920_v5 }
 0x1bb   : > { %v910_v41 = vpop.f32.mrf.mxu2  ;;  %v1124_v6 = vpop.f32.mrf.mxu1 }
 0x1bc   : > { %v1445_v61 = vpop.f32.mrf.mxu0 }
 0x1bd   : > { %v1459_v17 = vmax.f32 %v1445_v61, 0.0 }
 0x1bf   : > { %v1464_v8 = vpack.c.bf16 %v1459_v17, %v1458_v56  ;;  %v599_v17 = vadd.f32 %v2656_v9, %v2663_v16 }
 0x1c0   : > { %2209 = vmatmul.msk.bf16.gmra.mxu3 %vm516_vm6, %v925_v45  ;;  %2302 = vmatmul.msk.bf16.gmra.mxu2 %vm336_vm2, %v1607_v43 }
 0x1c1   : > { %2276 = vmatmul.msk.bf16.gmra.mxu1 %vm516_vm6, %v1463_v40 }
 0x1c3   : > { %v1230_v10 = vpop.f32.mrf.mxu2  ;;  %v1126_v44 = vpop.f32.mrf.mxu1 }
 0x1c4   : > { %v1254_v53 = vmax.f32 %v1230_v10, 0.0  ;;  %v1448_v12 = vpop.f32.mrf.mxu0 }
 0x1c5   : > { %v1460_v7 = vmax.f32 %v1448_v12, 0.0 }
 0x1c7   : > { %v1465_v22 = vpack.c.bf16 %v1460_v7, %v1460_v7 }
 0x1cb   : > { %v1232_v48 = vpop.f32.mrf.mxu2  ;;  %v1129_v35 = vpop.f32.mrf.mxu1 }
 0x1cc   : > { %v1255_v54 = vmax.f32 %v1232_v48, 0.0  ;;  %v1450_v21 = vpop.f32.mrf.mxu0 }
 0x1ce   : > { %v1263_v55 = vpack.c.bf16 %v1255_v54, %v1254_v53 }
 0x1d0   : > { %2247 = vmatmul.msk.bf16.vlgmr.msra.gmra.mxu3 %vm516_vm6, %v1263_v55  ;;  %2303 = vmatmul.msk.bf16.gmra.mxu2 %vm336_vm2, %v1606_v39 }
 0x1d1   : > { %2277 = vmatmul.msk.bf16.gmra.mxu1 %vm516_vm6, %v1464_v8  ;;  %v811_v8 = vadd.f32 %v2743_v18, %v599_v17 }
 0x1d3   : > { %v1235_v59 = vpop.f32.mrf.mxu2  ;;  %v1131_v31 = vpop.f32.mrf.mxu1 }
 0x1d4   : > { %v1256_v13 = vmax.f32 %v1235_v59, 0.0  ;;  %v1769_v24 = vpop.f32.mrf.mxu0 }
 0x1d5   : > { %v1793_v37 = vmax.f32 %v1769_v24, 0.0 }
 0x1db   : > { %v1237_v11 = vpop.f32.mrf.mxu2  ;;  %v1134_v41 = vpop.f32.mrf.mxu1 }
 0x1dc   : > { %v1257_v14 = vmax.f32 %v1237_v11, 0.0  ;;  %v1771_v39 = vpop.f32.mrf.mxu0 }
 0x1dd   : > { %v1794_v5 = vmax.f32 %v1771_v39, 0.0 }
 0x1de   : > { %v1264_v47 = vpack.c.bf16 %v1257_v14, %v1256_v13 }
 0x1df   : > { %v1802_v42 = vpack.c.bf16 %v1794_v5, %v1793_v37 }
 0x1e0   : > { %2248 = vmatmul.msk.bf16.gmra.mxu3 %vm516_vm6, %v1264_v47 }
 0x1e1   : > { %2278 = vmatmul.msk.bf16.gmra.mxu1 %vm516_vm6, %v1465_v22 }
 0x1e3   : > { %v1240_v52 = vpop.f32.mrf.mxu2  ;;  %v2815_v58 = vpop.f32.mrf.mxu1 }
 0x1e4   : > { %v1258_v25 = vmax.f32 %v1240_v52, 0.0  ;;  %v1774_v45 = vpop.f32.mrf.mxu0 }
 0x1e5   : > { %v1795_v49 = vmax.f32 %v1774_v45, 0.0 }
 0x1eb   : > { %v1242_v23 = vpop.f32.mrf.mxu2  ;;  %v1139_v56 = vpop.f32.mrf.mxu1 }
 0x1ec   : > { %v1259_v30 = vmax.f32 %v1242_v23, 0.0  ;;  %v1776_v54 = vpop.f32.mrf.mxu0 }
 0x1ed   : > { %v1796_v55 = vmax.f32 %v1776_v54, 0.0 }
 0x1ee   : > { %v1265_v32 = vpack.c.bf16 %v1259_v30, %v1258_v25  ;;  %v604_v30 = vadd.f32 %v2675_v34, %v2682_v2 }
 0x1ef   : > { %v1803_v61 = vpack.c.bf16 %v1796_v55, %v1795_v49  ;;  %v609_v49 = vadd.f32 %v2694_v57, %v2700_v63  ;;  %v614_v63 = vadd.f32 %v2711_v4, %v2715_v33  ;;  %v1897_v4 = vld [vmem:[%s2931_s5] sm:$0x7] }
 0x1f0   : > { %2249 = vmatmul.msk.bf16.gmra.mxu3 %vm516_vm6, %v1265_v32  ;;  %v1896_v33 = vld [vmem:[%s2930_s4] sm:$0xf] }
 0x1f1   : > { %2316 = vmatmul.msk.bf16.vlgmr.msra.gmra.mxu1 %vm516_vm6, %v1802_v42 }
 0x1f3   : > { %v1245_v38 = vpop.f32.mrf.mxu2  ;;  %v1141_v7 = vpop.f32.mrf.mxu1 }
 0x1f4   : > { %v1260_v46 = vmax.f32 %v1245_v38, 0.0  ;;  %v1779_v47 = vpop.f32.mrf.mxu0 }
 0x1f5   : > { %v1797_v22 = vmax.f32 %v1779_v47, 0.0 }
 0x1fb   : > { %v1247_v43 = vpop.f32.mrf.mxu2 }
 0x1fc   : > { %v1261_v10 = vmax.f32 %v1247_v43, 0.0  ;;  %v1781_v16 = vpop.f32.mrf.mxu0 }
 0x1fd   : > { %v1798_v23 = vmax.f32 %v1781_v16, 0.0 }
 0x1fe   : > { %v1266_v36 = vpack.c.bf16 %v1261_v10, %v1260_v46 }
 0x1ff   : > { %v1804_v25 = vpack.c.bf16 %v1798_v23, %v1797_v22 }
 0x200   : > { %2250 = vmatmul.msk.bf16.gmra.mxu3 %vm516_vm6, %v1266_v36 }
 0x201   : > { %2317 = vmatmul.msk.bf16.gmra.mxu1 %vm516_vm6, %v1803_v61 }
 0x203   : > { %v955_v40 = vpop.f32.mrf.mxu3  ;;  %v1250_v48 = vpop.f32.mrf.mxu2 }
 0x204   : > { %v979_v53 = vadd.f32 %v955_v40, %v2736_v1  ;;  %v1262_v11 = vmax.f32 %v1250_v48, 0.0 }
 0x206   : > { %v2819_v59 = vadd.f32 %v1124_v6, %v979_v53  ;;  %v1267_v1 = vpack.c.bf16 %v1262_v11, %v1262_v11 }
 0x20b   : > { %v957_v12 = vpop.f32.mrf.mxu3  ;;  %v1252_v13 = vpop.f32.mrf.mxu2 }
 0x20c   : > { %v980_v14 = vadd.f32 %v957_v12, %v811_v8 }
 0x20e   : > { %v2825_v52 = vadd.f32 %v1126_v44, %v980_v14  ;;  %v2829_v24 = vpop.f32.mrf.mxu1  ;;  %v813_v44 = vadd.f32 %v2757_v28, %v604_v30 }
 0x210   : > { %2251 = vmatmul.msk.bf16.gmra.mxu3 %vm516_vm6, %v1267_v1 }
 0x211   : > { %2318 = vmatmul.msk.bf16.gmra.mxu1 %vm516_vm6, %v1804_v25 }
 0x213   : > { %v960_v6 = vpop.f32.mrf.mxu3  ;;  %v1632_v21 = vpop.f32.mrf.mxu2 }
 0x214   : > { %v981_v9 = vadd.f32 %v960_v6, %v2747_v51  ;;  %v1656_v38 = vmax.f32 %v1632_v21, 0.0  ;;  %v1784_v51 = vpop.f32.mrf.mxu0 }
 0x215   : > { %v1799_v10 = vmax.f32 %v1784_v51, 0.0 }
 0x216   : > { %v2831_v18 = vadd.f32 %v1129_v35, %v981_v9  ;;  %v1146_v42 = vpop.f32.mrf.mxu1 }
 0x21b   : > { %v962_v32 = vpop.f32.mrf.mxu3  ;;  %v1634_v37 = vpop.f32.mrf.mxu2 }
 0x21c   : > { %v982_v39 = vadd.f32 %v962_v32, %v813_v44  ;;  %v1657_v5 = vmax.f32 %v1634_v37, 0.0  ;;  %v1786_v2 = vpop.f32.mrf.mxu0  ;;  %v1950_v44 = vsel %vm532_vm5, %v1896_v33, 0 }
 0x21d   : > { %v1800_v36 = vmax.f32 %v1786_v2, 0.0  ;;  %1959 = vmatpush.bf16.msra.mxu3 %v1950_v44 }
 0x21e   : > { %v1665_v43 = vpack.c.bf16 %v1657_v5, %v1656_v38  ;;  %v2837_v45 = vadd.f32 %v1131_v31, %v982_v39  ;;  %v1495_v28 = vpop.f32.mrf.mxu1  ;;  %v815_v31 = vadd.f32 %v2770_v19, %v609_v49  ;;  %v817_v19 = vadd.f32 %v2783_v20, %v614_v63 }
 0x21f   : > { %v1805_v48 = vpack.c.bf16 %v1800_v36, %v1799_v10 }
 0x220   : > { %2305 = vmatmul.msk.bf16.vlgmr.msrb.gmra.mxu3 %vm516_vm6, %v1665_v43 }
 0x221   : > { %2319 = vmatmul.msk.bf16.gmra.mxu1 %vm516_vm6, %v1805_v48 }
 0x223   : > { %v965_v35 = vpop.f32.mrf.mxu3  ;;  %v1637_v46 = vpop.f32.mrf.mxu2 }
 0x224   : > { %v983_v34 = vadd.f32 %v965_v35, %v2761_v0  ;;  %v1658_v55 = vmax.f32 %v1637_v46, 0.0  ;;  %v1789_v25 = vpop.f32.mrf.mxu0 }
 0x225   : > { %v1801_v20 = vmax.f32 %v1789_v25, 0.0 }
 0x226   : > { %v2841_v40 = vadd.f32 %v1134_v41, %v983_v34  ;;  %v1497_v0 = vpop.f32.mrf.mxu1 }
 0x227   : > { %v1806_v37 = vpack.c.bf16 %v1801_v20, %v1801_v20 }
 0x22b   : > { %v967_v53 = vpop.f32.mrf.mxu3  ;;  %v1639_v54 = vpop.f32.mrf.mxu2 }
 0x22c   : > { %v2847_v61 = vadd.f32 %v967_v53, %v815_v31  ;;  %v1659_v17 = vmax.f32 %v1639_v54, 0.0  ;;  %v1791_v51 = vpop.f32.mrf.mxu0 }
 0x22e   : > { %v1666_v8 = vpack.c.bf16 %v1659_v17, %v1658_v55  ;;  %v1500_v13 = vpop.f32.mrf.mxu1 }
 0x230   : > { %2306 = vmatmul.msk.bf16.gmra.mxu3 %vm516_vm6, %v1666_v8 }
 0x231   : > { %2320 = vmatmul.msk.bf16.gmra.mxu1 %vm516_vm6, %v1806_v37 }
 0x233   : > { %v970_v41 = vpop.f32.mrf.mxu3  ;;  %v1642_v11 = vpop.f32.mrf.mxu2 }
 0x234   : > { %v985_v12 = vadd.f32 %v970_v41, %v2774_v29  ;;  %v1660_v1 = vmax.f32 %v1642_v11, 0.0 }
 0x236   : > { %v2851_v57 = vadd.f32 %v1139_v56, %v985_v12  ;;  %v1502_v22 = vpop.f32.mrf.mxu1  ;;  %v1153_v12 = vadd.f32 %v2815_v58, %v2847_v61 }
 0x23b   : > { %v972_v14 = vpop.f32.mrf.mxu3  ;;  %v1644_v47 = vpop.f32.mrf.mxu2 }
 0x23c   : > { %v986_v6 = vadd.f32 %v972_v14, %v817_v19  ;;  %v1661_v21 = vmax.f32 %v1644_v47, 0.0 }
 0x23e   : > { %v1667_v9 = vpack.c.bf16 %v1661_v21, %v1660_v1  ;;  %v2856_v16 = vadd.f32 %v1141_v7, %v986_v6  ;;  %v1505_v30 = vpop.f32.mrf.mxu1  ;;  %v1899_v7 = vand.u32 %v1897_v4, %v2483_v3 }
 0x240   : > { %2307 = vmatmul.msk.bf16.gmra.mxu3 %vm516_vm6, %v1667_v9  ;;  %1908 = vmatpush.bf16.msra.mxu2 %v1899_v7 }
 0x243   : > { %v975_v29 = vpop.f32.mrf.mxu3  ;;  %v1647_v23 = vpop.f32.mrf.mxu2  ;;  %2321 = vmatmul.msk.bf16.vlgmr.msra.gmra.mxu2 %vm336_vm2, %v2567_v50 }
 0x244   : > { %v987_v56 = vadd.f32 %v975_v29, %v2787_v60  ;;  %v1662_v39 = vmax.f32 %v1647_v23, 0.0 }
 0x246   : > { %v1156_v32 = vadd.f32 %v2829_v24, %v987_v56  ;;  %v1507_v42 = vpop.f32.mrf.mxu1 }
 0x24b   : > { %v977_v60 = vpop.f32.mrf.mxu3  ;;  %v1649_v38 = vpop.f32.mrf.mxu2 }
 0x24c   : > { %v1663_v5 = vmax.f32 %v1649_v38, 0.0 }
 0x24e   : > { %v1668_v43 = vpack.c.bf16 %v1663_v5, %v1662_v39  ;;  %v1510_v46 = vpop.f32.mrf.mxu1 }
 0x250   : > { %2308 = vmatmul.msk.bf16.gmra.mxu3 %vm516_vm6, %v1668_v43 }
 0x253   : > { %v1297_v3 = vpop.f32.mrf.mxu3  ;;  %v1652_v35 = vpop.f32.mrf.mxu2  ;;  %2322 = vmatmul.msk.bf16.gmra.mxu2 %vm336_vm2, %v2576_v62 }
 0x254   : > { %v1321_v24 = vadd.f32 %v1297_v3, %v2819_v59  ;;  %v1664_v34 = vmax.f32 %v1652_v35, 0.0 }
 0x256   : > { %v1519_v10 = vadd.f32 %v1495_v28, %v1321_v24  ;;  %v1669_v48 = vpack.c.bf16 %v1664_v34, %v1664_v34  ;;  %v1512_v49 = vpop.f32.mrf.mxu1 }
 0x25b   : > { %v1299_v50 = vpop.f32.mrf.mxu3  ;;  %v1654_v2 = vpop.f32.mrf.mxu2 }
 0x25c   : > { %v1322_v36 = vadd.f32 %v1299_v50, %v2825_v52 }
 0x25e   : > { %v1520_v31 = vadd.f32 %v1497_v0, %v1322_v36  ;;  %v1515_v55 = vpop.f32.mrf.mxu1 }
 0x260   : > { %2309 = vmatmul.msk.bf16.gmra.mxu3 %vm516_vm6, %v1669_v48 }
 0x263   : > { %v1302_v53 = vpop.f32.mrf.mxu3  ;;  %2323 = vmatmul.msk.bf16.gmra.mxu2 %vm336_vm2, %v2594_v15 }
 0x264   : > { %v1323_v54 = vadd.f32 %v1302_v53, %v2831_v18 }
 0x266   : > { %v1521_v59 = vadd.f32 %v1500_v13, %v1323_v54  ;;  %v1517_v17 = vpop.f32.mrf.mxu1 }
 0x26b   : > { %v1304_v28 = vpop.f32.mrf.mxu3 }
 0x26c   : > { %v1324_v62 = vadd.f32 %v1304_v28, %v2837_v45 }
 0x26e   : > { %v1522_v8 = vadd.f32 %v1502_v22, %v1324_v62  ;;  %v1836_v0 = vpop.f32.mrf.mxu1 }
 0x273   : > { %v1307_v41 = vpop.f32.mrf.mxu3  ;;  %2324 = vmatmul.msk.bf16.gmra.mxu2 %vm336_vm2, %v2612_v27 }
 0x274   : > { %v1325_v52 = vadd.f32 %v1307_v41, %v2841_v40 }
 0x276   : > { %v1523_v11 = vadd.f32 %v1505_v30, %v1325_v52  ;;  %v1838_v15 = vpop.f32.mrf.mxu1 }
 0x27b   : > { %v1309_v18 = vpop.f32.mrf.mxu3 }
 0x27c   : > { %v1326_v13 = vadd.f32 %v1309_v18, %v1153_v12 }
 0x27e   : > { %v1524_v63 = vadd.f32 %v1507_v42, %v1326_v13  ;;  %v1841_v1 = vpop.f32.mrf.mxu1 }
 0x283   : > { %v1312_v19 = vpop.f32.mrf.mxu3  ;;  %2325 = vmatmul.msk.bf16.gmra.mxu2 %vm336_vm2, %v2606_v26 }
 0x284   : > { %v1327_v45 = vadd.f32 %v1312_v19, %v2851_v57  ;;  %v2392_v57 = vld [vmem:[%s2929_s3] ss:$0 sm:$0xff] }
 0x286   : > { %v1525_v14 = vadd.f32 %v1510_v46, %v1327_v45  ;;  %v1843_v21 = vpop.f32.mrf.mxu1 }
 0x28b   : > { %v1314_v40 = vpop.f32.mrf.mxu3 }
 0x28c   : > { %v1328_v47 = vadd.f32 %v1314_v40, %v2856_v16 }
 0x28e   : > { %v1526_v6 = vadd.f32 %v1512_v49, %v1328_v47  ;;  %v1846_v9 = vpop.f32.mrf.mxu1 }
 0x293   : > { %v1317_v58 = vpop.f32.mrf.mxu3 }
 0x294   : > { %v1329_v61 = vadd.f32 %v1317_v58, %v1156_v32 }
 0x296   : > { %v1527_v27 = vadd.f32 %v1515_v55, %v1329_v61  ;;  %v1848_v25 = vpop.f32.mrf.mxu1 }
 0x29b   : > { %v1319_v22 = vpop.f32.mrf.mxu3 }
 0x29e   : > { %v1851_v37 = vpop.f32.mrf.mxu1 }
 0x2a3   : > { %v1699_v29 = vpop.f32.mrf.mxu3 }
 0x2a4   : > { %v1723_v23 = vadd.f32 %v1699_v29, %v1519_v10 }
 0x2a6   : > { %v1860_v56 = vadd.f32 %v1836_v0, %v1723_v23  ;;  %v1853_v43 = vpop.f32.mrf.mxu1 }
 0x2a8   : > { %v1873_v33 = vadd.f32 %v2392_v57, %v1860_v56 }
 0x2aa   : > { %v1882_v30 = vmax.f32 %v1873_v33, 0.0 }
 0x2ab   : > { %v1701_v26 = vpop.f32.mrf.mxu3 }
 0x2ac   : > { %v1724_v4 = vadd.f32 %v1701_v26, %v1520_v31 }
 0x2ae   : > { %v1861_v16 = vadd.f32 %v1838_v15, %v1724_v4  ;;  %v1856_v50 = vpop.f32.mrf.mxu1 }
 0x2b0   : > { %v1874_v20 = vadd.f32 %v2392_v57, %v1861_v16 }
 0x2b2   : > { %v1883_v7 = vmax.f32 %v1874_v20, 0.0 }
 0x2b3   : > { %v1704_v44 = vpop.f32.mrf.mxu3 }
 0x2b4   : > { %v1891_v32 = vpack.c.bf16 %v1883_v7, %v1882_v30  ;;  %v1725_v60 = vadd.f32 %v1704_v44, %v1521_v59 }
 0x2b6   : > { %2326 = vmatmul.msk.bf16.vlgmr.msra.gmra.mxu3 %vm516_vm6, %v1891_v32  ;;  %v1862_v38 = vadd.f32 %v1841_v1, %v1725_v60  ;;  %v1858_v53 = vpop.f32.mrf.mxu1 }
 0x2b8   : > { %v1875_v51 = vadd.f32 %v2392_v57, %v1862_v38 }
 0x2ba   : > { %v1884_v35 = vmax.f32 %v1875_v51, 0.0 }
 0x2bb   : > { %v1706_v39 = vpop.f32.mrf.mxu3 }
 0x2bc   : > { %v1726_v5 = vadd.f32 %v1706_v39, %v1522_v8 }
 0x2be   : > { %v1863_v42 = vadd.f32 %v1843_v21, %v1726_v5 }
 0x2c0   : > { %v1876_v3 = vadd.f32 %v2392_v57, %v1863_v42 }
 0x2c2   : > { %v1885_v24 = vmax.f32 %v1876_v3, 0.0 }
 0x2c3   : > { %v1709_v46 = vpop.f32.mrf.mxu3 }
 0x2c4   : > { %v1892_v10 = vpack.c.bf16 %v1885_v24, %v1884_v35  ;;  %v1727_v34 = vadd.f32 %v1709_v46, %v1523_v11 }
 0x2c6   : > { %2327 = vmatmul.msk.bf16.gmra.mxu3 %vm516_vm6, %v1892_v10  ;;  %v1864_v2 = vadd.f32 %v1846_v9, %v1727_v34  ;;  %v1910_v58 = vpop.f32.mrf.mxu2 }
 0x2c8   : > { %v1877_v49 = vadd.f32 %v2392_v57, %v1864_v2 }
 0x2ca   : > { %v1886_v55 = vmax.f32 %v1877_v49, 0.0 }
 0x2cb   : > { %v1711_v36 = vpop.f32.mrf.mxu3 }
 0x2cc   : > { %v1728_v48 = vadd.f32 %v1711_v36, %v1524_v63 }
 0x2ce   : > { %v1865_v31 = vadd.f32 %v1848_v25, %v1728_v48 }
 0x2d0   : > { %v1878_v54 = vadd.f32 %v2392_v57, %v1865_v31 }
 0x2d2   : > { %v1887_v59 = vmax.f32 %v1878_v54, 0.0 }
 0x2d3   : > { %v1714_v28 = vpop.f32.mrf.mxu3 }
 0x2d4   : > { %v1893_v62 = vpack.c.bf16 %v1887_v59, %v1886_v55  ;;  %v1729_v17 = vadd.f32 %v1714_v28, %v1525_v14 }
 0x2d6   : > { %2328 = vmatmul.msk.bf16.gmra.mxu3 %vm516_vm6, %v1893_v62  ;;  %v1866_v8 = vadd.f32 %v1851_v37, %v1729_v17 }
 0x2d8   : > { %v1879_v11 = vadd.f32 %v2392_v57, %v1866_v8 }
 0x2da   : > { %v1888_v18 = vmax.f32 %v1879_v11, 0.0 }
 0x2db   : > { %v1716_v41 = vpop.f32.mrf.mxu3 }
 0x2dc   : > { %v1730_v52 = vadd.f32 %v1716_v41, %v1526_v6  ;;  %v1912_v6 = vpop.f32.mrf.mxu2 }
 0x2de   : > { %v1867_v0 = vadd.f32 %v1853_v43, %v1730_v52 }
 0x2e0   : > { %v1880_v12 = vadd.f32 %v2392_v57, %v1867_v0 }
 0x2e2   : > { %v1889_v13 = vmax.f32 %v1880_v12, 0.0 }
 0x2e3   : > { %v1719_v63 = vpop.f32.mrf.mxu3 }
 0x2e4   : > { %v1894_v15 = vpack.c.bf16 %v1889_v13, %v1888_v18  ;;  %v1731_v19 = vadd.f32 %v1719_v63, %v1527_v27  ;;  %v1915_v61 = vpop.f32.mrf.mxu2  ;;  %v2393_v27 = vld [vmem:[%s2932_s6] ss:$0 sm:$0xff] }
 0x2e6   : > { %v1868_v45 = vadd.f32 %v1856_v50, %v1731_v19  ;;  %2329 = vmatmul.msk.bf16.gmra.mxu3 %vm516_vm6, %v1894_v15 }
 0x2e8   : > { %v1881_v40 = vadd.f32 %v2392_v57, %v1868_v45 }
 0x2ea   : > { %v1890_v14 = vmax.f32 %v1881_v40, 0.0 }
 0x2eb   : > { %v1721_v47 = vpop.f32.mrf.mxu3 }
 0x2ec   : > { %v1895_v1 = vpack.c.bf16 %v1890_v14, %v1890_v14  ;;  %v1917_v21 = vpop.f32.mrf.mxu2 }
 0x2f4   : > { %v1920_v22 = vpop.f32.mrf.mxu2 }
 0x2f6   : > { %2330 = vmatmul.msk.bf16.gmra.mxu3 %vm516_vm6, %v1895_v1 }
 0x2fc   : > { %v1922_v9 = vpop.f32.mrf.mxu2 }
 0x304   : > { %v1925_v57 = vpop.f32.mrf.mxu2 }
 0x30c   : > { %v1927_v33 = vpop.f32.mrf.mxu2 }
 0x314   : > { %v1930_v7 = vpop.f32.mrf.mxu2 }
 0x31c   : > { %v1932_v60 = vpop.f32.mrf.mxu2 }
 0x339   : > { %v1961_v29 = vpop.f32.mrf.mxu3 }
 0x33a   : > { %v1962_v23 = vadd.f32 %v1961_v29, %v1910_v58 }
 0x33c   : > { %v1989_v56 = vadd.f32 %v2393_v27, %v1962_v23 }
 0x33e   : > { %1998 = vst [vmem:[%s2906_s21] sm:$0xff] %v1989_v56 }
 0x341   : > { %v1963_v25 = vpop.f32.mrf.mxu3 }
 0x342   : > { %v1964_v26 = vadd.f32 %v1963_v25, %v1912_v6 }
 0x344   : > { %v1990_v4 = vadd.f32 %v2393_v27, %v1964_v26 }
 0x346   : > { %1999 = vst [vmem:[%s2906_s21 + $0x8] sm:$0xff] %v1990_v4 }
 0x349   : > { %v1966_v16 = vpop.f32.mrf.mxu3 }
 0x34a   : > { %v1967_v20 = vadd.f32 %v1966_v16, %v1915_v61 }
 0x34c   : > { %v1991_v30 = vadd.f32 %v2393_v27, %v1967_v20 }
 0x34e   : > { %2000 = vst [vmem:[%s2906_s21 + $0x10] sm:$0xff] %v1991_v30 }
 0x351   : > { %v1968_v44 = vpop.f32.mrf.mxu3 }
 0x352   : > { %v1969_v32 = vadd.f32 %v1968_v44, %v1917_v21 }
 0x354   : > { %v1992_v37 = vadd.f32 %v2393_v27, %v1969_v32 }
 0x356   : > { %2001 = vst [vmem:[%s2906_s21 + $0x18] sm:$0xff] %v1992_v37 }
 0x359   : > { %v1971_v38 = vpop.f32.mrf.mxu3 }
 0x35a   : > { %v1972_v39 = vadd.f32 %v1971_v38, %v1920_v22 }
 0x35c   : > { %v1993_v5 = vadd.f32 %v2393_v27, %v1972_v39 }
 0x35e   : > { %2002 = vst [vmem:[%s2906_s21 + $0x20] sm:$0xff] %v1993_v5 }
 0x361   : > { %v1973_v51 = vpop.f32.mrf.mxu3 }
 0x362   : > { %v1974_v42 = vadd.f32 %v1973_v51, %v1922_v9 }
 0x364   : > { %v1994_v43 = vadd.f32 %v2393_v27, %v1974_v42 }
 0x366   : > { %2003 = vst [vmem:[%s2906_s21 + $0x28] sm:$0xff] %v1994_v43 }
 0x369   : > { %v1976_v3 = vpop.f32.mrf.mxu3 }
 0x36a   : > { %v1977_v35 = vadd.f32 %v1976_v3, %v1925_v57 }
 0x36c   : > { %v1995_v24 = vadd.f32 %v2393_v27, %v1977_v35 }
 0x36e   : > { %2004 = vst [vmem:[%s2906_s21 + $0x30] sm:$0xff] %v1995_v24 }
 0x371   : > { %v1978_v46 = vpop.f32.mrf.mxu3 }
 0x372   : > { %v1979_v10 = vadd.f32 %v1978_v46, %v1927_v33 }
 0x374   : > { %v1996_v34 = vadd.f32 %v2393_v27, %v1979_v10 }
 0x376   : > { %2005 = vst [vmem:[%s2906_s21 + $0x38] sm:$0xff] %v1996_v34 }
 0x379   : > { %v1981_v50 = vpop.f32.mrf.mxu3 }
 0x37a   : > { %v1982_v2 = vadd.f32 %v1981_v50, %v1930_v7 }
 0x37c   : > { %v1997_v36 = vadd.f32 %v2393_v27, %v1982_v2 }
 0x37e   : > { %2006 = vst [vmem:[%s2906_s21 + $0x40] sm:$0xff] %v1997_v36 }
 0x381   : > { %v1983_v48 = vpop.f32.mrf.mxu3 }
 0x382 PF: > { %s17_s26 = sadd.s32 1, %s2419_s26   ;;  %s2934_s24 = smov %s2415_s25 }
 0x383   : > { %p14_p5 = scmp.ge.s32.totalorder %s17_s26, 4   ;;  %s2935_s25 = smov %s2937_s27 }
 0x385   :  { %16 = sbr.rel (!%p14_p5) target bundleno = 2 (0x2), region = 86 }

</bundles_post_ra>
